<compile_context>
chip_gen: v6e
topology: v6e:2x2x1
jax: 0.10.0
libtpu: 0.0.40
codegen_flags: <defaults>
</compile_context>

<pallas_src>
import functools

import numpy as np

import jax
import jax.numpy as jnp
from jax.experimental import pallas as pl
from jax.experimental.pallas import tpu as pltpu


# ------------------------------------------------------------------ in-kernel helpers

def _leaky(x, slope):
    return jnp.where(x >= 0, x, slope * x)


def _shift_rows(x3, delta):
    """Per-image row shift (axis 1) with zero fill for (Bb, H, L) blocks.

    delta=+1: row y holds x[y-1] (zero at y=0);  delta=-1: row y holds x[y+1].
    """
    bb, h, l = x3.shape
    z = jnp.zeros((bb, 1, l), x3.dtype)
    if delta == 1:
        return jnp.concatenate([z, x3[:, :h - 1, :]], axis=1)
    return jnp.concatenate([x3[:, 1:, :], z], axis=1)


# ------------------------------------------------------------------ kernels

def _main_kernel(x_ref, w1mid_ref, w1tb_ref, b1id_ref, w2mid_ref, w2tb_ref,
                 b2_ref, *out_refs, slope, with_xres):
    """Fused conv_1(3x3)+identity(1x1), LeakyReLU, conv_2(3x3), LeakyReLU,
    residual base = out2 + identity(x).  All matmuls run with M = Bb*H rows."""
    x3 = x_ref[...]                                     # (Bb, H, W*Cin)
    bb, h, wcin = x3.shape
    wcout = w1tb_ref.shape[-1]
    m = bb * h

    # conv_1 middle row + 1x1 identity fused along N (N = 2*W*Cout = 256).
    t = jnp.dot(x3.reshape(m, wcin), w1mid_ref[...],
                preferred_element_type=jnp.float32) + b1id_ref[...]
    # conv_1 top/bottom rows fused along K (K = 2*W*Cin).
    xnb = jnp.concatenate([_shift_rows(x3, 1), _shift_rows(x3, -1)], axis=2)
    o1 = _leaky(t[:, :wcout]
                + jnp.dot(xnb.reshape(m, 2 * wcin), w1tb_ref[...],
                          preferred_element_type=jnp.float32), slope)
    xres = t[:, wcout:]

    # conv_2: same mid + top/bottom split.
    o13 = o1.reshape(bb, h, wcout)
    onb = jnp.concatenate([_shift_rows(o13, 1), _shift_rows(o13, -1)], axis=2)
    o2 = _leaky(jnp.dot(o1, w2mid_ref[...], preferred_element_type=jnp.float32)
                + jnp.dot(onb.reshape(m, 2 * wcout), w2tb_ref[...],
                          preferred_element_type=jnp.float32)
                + b2_ref[...], slope)

    base = (o2 + xres).reshape(bb, h, wcout)
    out_refs[0][...] = base.astype(out_refs[0].dtype)
    if with_xres:
        out_refs[1][...] = xres.reshape(bb, h, wcout).astype(out_refs[1].dtype)


def _fft_mlp_kernel(a_ref, wf1_ref, bf1_ref, wf2_ref, bf2_ref, o_ref, *, slope):
    """conv_fft_1 (1x1) + LeakyReLU + conv_fft_2 (1x1), M = Bb*H rows."""
    a3 = a_ref[...]
    bb, h, wc = a3.shape
    a = a3.reshape(bb * h, wc)
    hdn = _leaky(jnp.dot(a, wf1_ref[...], preferred_element_type=jnp.float32)
                 + bf1_ref[...], slope)
    z = jnp.dot(hdn, wf2_ref[...], preferred_element_type=jnp.float32) + bf2_ref[...]
    o_ref[...] = z.reshape(bb, h, wc).astype(o_ref.dtype)


def _tail_kernel(*refs, wc, with_fft):
    """out = base (+ fft_res) and conv_down(out) (4x4 / stride 2 / pad 1).

    Inputs arrive in quad-row layout (Bb, H/4, 4*W*C): quad row q holds input
    rows 4q..4q+3 along lanes.  The down conv for output-row pair (2q, 2q+1) is
    one (H/4, 6*W*C) @ (6*W*C, 2*Wo*Cout=128) matmul -> lane-dense output rows.
    """
    if with_fft:
        base_ref, fft_ref, gdq_ref, out_ref, down_ref = refs
        o3 = base_ref[...] + fft_ref[...]
        out_ref[...] = o3.astype(out_ref.dtype)
    else:
        base_ref, gdq_ref, down_ref = refs
        o3 = base_ref[...]
    bb = o3.shape[0]
    prev = _shift_rows(o3[:, :, 3 * wc:4 * wc], 1)     # input row 4q - 1 (zero pad)
    nxt = _shift_rows(o3[:, :, 0:wc], -1)              # input row 4q + 4 (zero pad)
    a = jnp.concatenate([prev, o3, nxt], axis=2)       # (Bb, H/4, 6*W*C)
    gdq = gdq_ref[...]
    for b in range(bb):                                # Bb is small & static
        d = jnp.dot(a[b], gdq, preferred_element_type=jnp.float32)
        down_ref[b] = d.astype(down_ref.dtype)


# ------------------------------------------------------------------ pallas_call wrappers

_PARALLEL = pltpu.CompilerParams(dimension_semantics=("parallel",))


def _batched(shape):
    return pl.BlockSpec(shape, lambda i: (i, 0, 0))


def _rep(shape):
    # Replicated (weight) blocks.  At scale, pipeline_mode=pl.Buffered(1) would
    # halve their VMEM footprint (constant index_map); irrelevant at 1-2 steps.
    return pl.BlockSpec(shape, lambda i: (0, 0))


def _main_call(x_flat, fp, *, bb, slope, with_xres):
    B, H, wcin = x_flat.shape
    wcout = fp["w1tb"].shape[-1]
    kern = functools.partial(_main_kernel, slope=slope, with_xres=with_xres)
    n_out = 2 if with_xres else 1
    out_shapes = tuple(jax.ShapeDtypeStruct((B, H, wcout), x_flat.dtype)
                       for _ in range(n_out))
    out_specs = tuple(_batched((bb, H, wcout)) for _ in range(n_out))
    wkeys = ("w1mid", "w1tb", "b1id", "w2mid", "w2tb", "b2f")
    flops = int(2 * B * H * (wcin * 2 * wcout + 2 * wcin * wcout
                             + wcout * wcout + 2 * wcout * wcout))
    bytes_accessed = int(4 * (x_flat.size + n_out * B * H * wcout
                              + sum(int(fp[k].size) for k in wkeys)))
    res = pl.pallas_call(
        kern,
        out_shape=out_shapes,
        grid=(B // bb,),
        in_specs=[_batched((bb, H, wcin))] + [_rep(fp[k].shape) for k in wkeys],
        out_specs=out_specs,
        compiler_params=_PARALLEL,
        cost_estimate=pl.CostEstimate(flops=flops, transcendentals=0,
                                      bytes_accessed=bytes_accessed),
    )(x_flat, *[fp[k] for k in wkeys])
    return res if with_xres else res[0]


def _fft_mlp_call(a_flat, fp, *, bb, slope):
    B, H, wc = a_flat.shape
    kern = functools.partial(_fft_mlp_kernel, slope=slope)
    flops = int(2 * B * H * 2 * wc * wc)
    bytes_accessed = int(4 * (2 * a_flat.size + 2 * wc * wc + 2 * wc))
    return pl.pallas_call(
        kern,
        out_shape=jax.ShapeDtypeStruct((B, H, wc), a_flat.dtype),
        grid=(B // bb,),
        in_specs=[_batched((bb, H, wc)),
                  _rep(fp["wf1_bd"].shape), _rep(fp["bf1f"].shape),
                  _rep(fp["wf2_bd"].shape), _rep(fp["bf2f"].shape)],
        out_specs=_batched((bb, H, wc)),
        compiler_params=_PARALLEL,
        cost_estimate=pl.CostEstimate(flops=flops, transcendentals=0,
                                      bytes_accessed=bytes_accessed),
    )(a_flat, fp["wf1_bd"], fp["bf1f"], fp["wf2_bd"], fp["bf2f"])


def _tail_call(base_q, fft_q, fp, *, bb, with_fft):
    B, Hq, L = base_q.shape            # L = 4 * W * Cout
    wc = L // 4
    wdo = fp["gdq"].shape[-1]          # 2 * (W//2) * Cout  (= 128 here)
    kern = functools.partial(_tail_kernel, wc=wc, with_fft=with_fft)
    in_arrays = [base_q] + ([fft_q] if with_fft else []) + [fp["gdq"]]
    in_specs = [_batched((bb, Hq, L))]
    if with_fft:
        in_specs.append(_batched((bb, Hq, L)))
    in_specs.append(_rep(fp["gdq"].shape))
    down_shape = jax.ShapeDtypeStruct((B, Hq, wdo), base_q.dtype)
    down_spec = _batched((bb, Hq, wdo))
    if with_fft:
        out_shape = (jax.ShapeDtypeStruct((B, Hq, L), base_q.dtype), down_shape)
        out_specs = (_batched((bb, Hq, L)), down_spec)
    else:
        out_shape = down_shape
        out_specs = down_spec
    flops = int(2 * B * Hq * 6 * wc * wdo)
    bytes_accessed = int(4 * ((2 if with_fft else 1) * base_q.size
                              + int(fp["gdq"].size)
                              + B * Hq * ((L if with_fft else 0) + wdo)))
    return pl.pallas_call(
        kern,
        out_shape=out_shape,
        grid=(B // bb,),
        in_specs=in_specs,
        out_specs=out_specs,
        compiler_params=_PARALLEL,
        cost_estimate=pl.CostEstimate(flops=flops, transcendentals=0,
                                      bytes_accessed=bytes_accessed),
    )(*in_arrays)


# ------------------------------------------------------------------ forward (Pallas)

def fftconvblock_forward(x_nchw, fp, *, use_fft_phase, use_fft_amp, downsample,
                         relu_slope, batch_block=None):
    """FFTConvBlock.forward (enc=dec=None). NCHW in, NCHW out ((down, out) if downsample).

    batch_block: images per grid step (default: whole batch -> max matmul M on
    v5e/v6e; use B//2 on v7x so both TensorCores get a grid step).
    """
    # TODO(synk): csff_enc/csff_dec path (enc/dec inputs) is not implemented.
    B, Cin, H, W = x_nchw.shape
    wcout = fp["b2f"].shape[-1]
    Cout = wcout // W
    bb = B if batch_block is None else batch_block
    assert B % bb == 0
    # NOTE: for chained blocks keep activations in this flat layout and only
    # transpose at model ingress/egress.
    x_flat = jnp.transpose(x_nchw, (0, 2, 3, 1)).reshape(B, H, W * Cin)
    use_fft = bool(use_fft_phase) != bool(use_fft_amp)

    if use_fft:
        base, xres = _main_call(x_flat, fp, bb=bb, slope=relu_slope, with_xres=True)
        # fft2/ifft2/abs/angle/complex-exp have no Pallas equivalent -> jnp.fft.
        xres4 = xres.reshape(B, H, W, Cout)
        xf = jnp.fft.fft2(xres4, axes=(1, 2))
        amp, phase = jnp.abs(xf), jnp.angle(xf)
        target = amp if use_fft_amp else phase
        proc = _fft_mlp_call(target.reshape(B, H, wcout), fp, bb=bb,
                             slope=relu_slope).reshape(B, H, W, Cout)
        rec = proc * jnp.exp(1j * phase) if use_fft_amp else amp * jnp.exp(1j * proc)
        fft_flat = jnp.real(jnp.fft.ifft2(rec, axes=(1, 2))).reshape(B, H, wcout)
        fft_flat = fft_flat.astype(base.dtype)
        if downsample:
            out_q, down_q = _tail_call(base.reshape(B, H // 4, 4 * wcout),
                                       fft_flat.reshape(B, H // 4, 4 * wcout),
                                       fp, bb=bb, with_fft=True)
            out_flat = out_q.reshape(B, H, wcout)
        else:
            # One elementwise add: let XLA fuse it with the ifft/real epilogue.
            out_flat, down_q = base + fft_flat, None
    else:
        out_flat = _main_call(x_flat, fp, bb=bb, slope=relu_slope, with_xres=False)
        down_q = (_tail_call(out_flat.reshape(B, H // 4, 4 * wcout), None, fp,
                             bb=bb, with_fft=False) if downsample else None)

    out = jnp.transpose(out_flat.reshape(B, H, W, Cout), (0, 3, 1, 2))
    if downsample:
        down = jnp.transpose(down_q.reshape(B, H // 2, W // 2, Cout), (0, 3, 1, 2))
        return down, out
    return out


# ------------------------------------------------------------------ host-side weight prep

def prepare_params(raw, *, H, W):
    """Expand raw conv weights into lane-dense flat-layout matrices (host, once)."""
    w1 = np.asarray(raw["w1"], np.float32)
    w2 = np.asarray(raw["w2"], np.float32)
    wid = np.asarray(raw["wid"], np.float32)
    wd = np.asarray(raw["wd"], np.float32)
    ci, co = w1.shape[2], w1.shape[3]
    assert H % 8 == 0 and H % 4 == 0 and W % 2 == 0
    assert (W * ci) % 128 == 0 and (W * co) % 128 == 0, (
        "lane-dense layout requires W*C to be a multiple of 128")

    def band_rows(w, stride, wout):
        kh, kw, ci_, co_ = w.shape
        gs = []
        for dy in range(kh):
            g = np.zeros((W * ci_, wout * co_), np.float32)
            for dx in range(kw):
                for ox in range(wout):
                    c = stride * ox + dx - 1
                    if 0 <= c < W:
                        g[c * ci_:(c + 1) * ci_, ox * co_:(ox + 1) * co_] += w[dy, dx]
            gs.append(g)
        return gs

    def tile_bias(b):
        return np.tile(np.asarray(b, np.float32), W).reshape(1, -1)

    g1 = band_rows(w1, 1, W)
    g2 = band_rows(w2, 1, W)
    wid_bd = np.kron(np.eye(W, dtype=np.float32), wid)

    # conv_down 4x4 / stride 2: one (6*W*co -> 2*(W//2)*co) matmul per quad row.
    Wo = W // 2
    gd = band_rows(wd, 2, Wo)
    WCo, woco = W * co, Wo * co
    gdq = np.zeros((6 * WCo, 2 * woco), np.float32)
    for dy in range(4):
        gdq[dy * WCo:(dy + 1) * WCo, :woco] += gd[dy]            # down row 2q
        gdq[(dy + 2) * WCo:(dy + 3) * WCo, woco:] += gd[dy]      # down row 2q+1

    return {
        "w1mid": jnp.asarray(np.concatenate([g1[1], wid_bd], axis=1)),
        "w1tb": jnp.asarray(np.concatenate([g1[0], g1[2]], axis=0)),
        "b1id": jnp.asarray(np.concatenate([tile_bias(raw["b1"]),
                                            tile_bias(raw["bid"])], axis=1)),
        "w2mid": jnp.asarray(g2[1]),
        "w2tb": jnp.asarray(np.concatenate([g2[0], g2[2]], axis=0)),
        "b2f": jnp.asarray(tile_bias(raw["b2"])),
        "wf1_bd": jnp.asarray(np.kron(np.eye(W, dtype=np.float32),
                                      np.asarray(raw["wf1"], np.float32))),
        "bf1f": jnp.asarray(tile_bias(raw["bf1"])),
        "wf2_bd": jnp.asarray(np.kron(np.eye(W, dtype=np.float32),
                                      np.asarray(raw["wf2"], np.float32))),
        "bf2f": jnp.asarray(tile_bias(raw["bf2"])),
        "gdq": jnp.asarray(gdq),
    }


# ------------------------------------------------------------------ pure-JAX reference

def fftconvblock_ref(x_nchw, raw, *, use_fft_phase, use_fft_amp, downsample, relu_slope):
    P = jax.lax.Precision.HIGHEST
    x = jnp.transpose(x_nchw, (0, 2, 3, 1))

    def conv(v, w, s, p):
        return jax.lax.conv_general_dilated(
            v, w, (s, s), p, dimension_numbers=("NHWC", "HWIO", "NHWC"), precision=P)

    def lrelu(v):
        return jnp.where(v >= 0, v, relu_slope * v)

    out = lrelu(conv(x, raw["w1"], 1, "SAME") + raw["b1"])
    out = lrelu(conv(out, raw["w2"], 1, "SAME") + raw["b2"])
    x_res = jnp.einsum("bhwc,cd->bhwd", x, raw["wid"], precision=P) + raw["bid"]
    if bool(use_fft_phase) != bool(use_fft_amp):
        xf = jnp.fft.fft2(x_res, axes=(1, 2))
        amp, phase = jnp.abs(xf), jnp.angle(xf)
        t = amp if use_fft_amp else phase
        t = lrelu(jnp.einsum("bhwc,cd->bhwd", t, raw["wf1"], precision=P) + raw["bf1"])
        t = jnp.einsum("bhwc,cd->bhwd", t, raw["wf2"], precision=P) + raw["bf2"]
        rec = (t * jnp.exp(1j * phase)) if use_fft_amp else (amp * jnp.exp(1j * t))
        fft_res = jnp.real(jnp.fft.ifft2(rec, axes=(1, 2)))
        out = out + x_res + fft_res
    else:
        out = out + x_res
    out_nchw = jnp.transpose(out, (0, 3, 1, 2))
    if downsample:
        dn = conv(out, raw["wd"], 2, ((1, 1), (1, 1)))
        return jnp.transpose(dn, (0, 3, 1, 2)), out_nchw
    return out_nchw


def make_raw_params(key, in_size, out_size, s=0.1):
    ks = jax.random.split(key, 11)
    n = jax.random.normal
    return {
        "w1": s * n(ks[0], (3, 3, in_size, out_size), jnp.float32),
        "b1": s * n(ks[1], (out_size,), jnp.float32),
        "w2": s * n(ks[2], (3, 3, out_size, out_size), jnp.float32),
        "b2": s * n(ks[3], (out_size,), jnp.float32),
        "wid": s * n(ks[4], (in_size, out_size), jnp.float32),
        "bid": s * n(ks[5], (out_size,), jnp.float32),
        "wf1": s * n(ks[6], (out_size, out_size), jnp.float32),
        "bf1": s * n(ks[7], (out_size,), jnp.float32),
        "wf2": s * n(ks[8], (out_size, out_size), jnp.float32),
        "bf2": s * n(ks[9], (out_size,), jnp.float32),
        "wd": s * n(ks[10], (4, 4, out_size, out_size), jnp.float32),
    }


# ------------------------------------------------------------------ main

if __name__ == "__main__":
    B, in_size, out_size, H, W = 2, 8, 8, 16, 16   # W * out_size = 128 (lane-dense)
    relu_slope = 0.2

    key = jax.random.PRNGKey(0)
    kx, kp = jax.random.split(key)
    x = jax.random.normal(kx, (B, in_size, H, W), jnp.float32)    # NCHW like PyTorch
    raw = make_raw_params(kp, in_size, out_size)
    fp = prepare_params(raw, H=H, W=W)

    tol = dict(rtol=1e-3, atol=1e-3)

    # A: FFT-amplitude branch + downsample (main -> fft-MLP -> fused add+down).
    cfg_a = dict(use_fft_phase=False, use_fft_amp=True, downsample=True,
                 relu_slope=relu_slope)
    fwd_a = jax.jit(functools.partial(fftconvblock_forward, **cfg_a))
    down, out = jax.block_until_ready(fwd_a(x, fp))
    rdown, rout = fftconvblock_ref(x, raw, **cfg_a)
    assert out.shape == (B, out_size, H, W), out.shape
    assert down.shape == (B, out_size, H // 2, W // 2), down.shape
    assert jnp.allclose(out, rout, **tol), float(jnp.max(jnp.abs(out - rout)))
    assert jnp.allclose(down, rdown, **tol), float(jnp.max(jnp.abs(down - rdown)))

    # B: plain branch, no downsample -> a single fused pallas_call (no dead xres).
    cfg_b = dict(use_fft_phase=False, use_fft_amp=False, downsample=False,
                 relu_slope=relu_slope)
    fwd_b = jax.jit(functools.partial(fftconvblock_forward, **cfg_b))
    out_b = jax.block_until_ready(fwd_b(x, fp))
    rout_b = fftconvblock_ref(x, raw, **cfg_b)
    assert out_b.shape == (B, out_size, H, W), out_b.shape
    assert jnp.allclose(out_b, rout_b, **tol), float(jnp.max(jnp.abs(out_b - rout_b)))

    # C: plain branch + downsample with 2 grid steps (batch_block=1, v7x-style).
    cfg_c = dict(use_fft_phase=False, use_fft_amp=False, downsample=True,
                 relu_slope=relu_slope)
    fwd_c = jax.jit(functools.partial(fftconvblock_forward, batch_block=1, **cfg_c))
    down_c, out_c = jax.block_until_ready(fwd_c(x, fp))
    rdown_c, rout_c = fftconvblock_ref(x, raw, **cfg_c)
    assert jnp.allclose(out_c, rout_c, **tol), float(jnp.max(jnp.abs(out_c - rout_c)))
    assert jnp.allclose(down_c, rdown_c, **tol), float(jnp.max(jnp.abs(down_c - rdown_c)))

    print("KERNEL_OK")
</pallas_src>

<mosaic_0001>
module attributes {stable_mosaic.version = 11 : i64} {
  func.func @_main_kernel(%arg0: i32, %arg1: memref<2x16x128xf32, #tpu.memory_space<vmem>>, %arg2: memref<128x256xf32, #tpu.memory_space<vmem>>, %arg3: memref<256x128xf32, #tpu.memory_space<vmem>>, %arg4: memref<1x256xf32, #tpu.memory_space<vmem>>, %arg5: memref<128x128xf32, #tpu.memory_space<vmem>>, %arg6: memref<256x128xf32, #tpu.memory_space<vmem>>, %arg7: memref<1x128xf32, #tpu.memory_space<vmem>>, %arg8: memref<2x16x128xf32, #tpu.memory_space<vmem>>, %arg9: memref<2x16x128xf32, #tpu.memory_space<vmem>>) attributes {dimension_semantics = [#tpu.dimension_semantics<parallel>], iteration_bounds = array<i64: 1>, scalar_prefetch = 0 : i64, scratch_operands = 0 : i64, tpu.core_type = #tpu.core_type<tc>, window_params = [{transform_indices = @transform_0, window_bounds = array<i64: 2, 16, 128>}, {pipeline_mode = #tpu.pipeline_mode<synchronous>, transform_indices = @transform_1, window_bounds = array<i64: 128, 256>}, {pipeline_mode = #tpu.pipeline_mode<synchronous>, transform_indices = @transform_2, window_bounds = array<i64: 256, 128>}, {pipeline_mode = #tpu.pipeline_mode<synchronous>, transform_indices = @transform_3, window_bounds = array<i64: 1, 256>}, {pipeline_mode = #tpu.pipeline_mode<synchronous>, transform_indices = @transform_4, window_bounds = array<i64: 128, 128>}, {pipeline_mode = #tpu.pipeline_mode<synchronous>, transform_indices = @transform_5, window_bounds = array<i64: 256, 128>}, {pipeline_mode = #tpu.pipeline_mode<synchronous>, transform_indices = @transform_6, window_bounds = array<i64: 1, 128>}, {transform_indices = @transform_7, window_bounds = array<i64: 2, 16, 128>}, {transform_indices = @transform_8, window_bounds = array<i64: 2, 16, 128>}]} {
    %c0 = arith.constant 0 : index
    %c0_0 = arith.constant 0 : index
    %c0_1 = arith.constant 0 : index
    %0 = vector.load %arg1[%c0, %c0_0, %c0_1] : memref<2x16x128xf32, #tpu.memory_space<vmem>>, vector<2x16x128xf32>
    %1 = vector.shape_cast %0 : vector<2x16x128xf32> to vector<32x128xf32>
    %c0_2 = arith.constant 0 : index
    %c0_3 = arith.constant 0 : index
    %2 = vector.load %arg2[%c0_2, %c0_3] : memref<128x256xf32, #tpu.memory_space<vmem>>, vector<128x256xf32>
    %cst = arith.constant dense<0.000000e+00> : vector<32x256xf32>
    %3 = tpu.matmul %1, %2, %cst {dimension_numbers = #tpu.dot_dimension_numbers<[1], [0], [0], [1], [0, 0, 1, 1], [], []>} : vector<32x128xf32>, vector<128x256xf32>, vector<32x256xf32> -> vector<32x256xf32>
    %c0_4 = arith.constant 0 : index
    %c0_5 = arith.constant 0 : index
    %4 = vector.load %arg4[%c0_4, %c0_5] : memref<1x256xf32, #tpu.memory_space<vmem>>, vector<1x256xf32>
    %5 = vector.broadcast %4 : vector<1x256xf32> to vector<32x256xf32>
    %6 = arith.addf %3, %5 : vector<32x256xf32>
    %cst_6 = arith.constant 0.000000e+00 : f32
    %7 = vector.broadcast %cst_6 : f32 to vector<2x1x128xf32>
    %8 = vector.extract_strided_slice %0 {offsets = [0, 0, 0], sizes = [2, 15, 128], strides = [1, 1, 1]} : vector<2x16x128xf32> to vector<2x15x128xf32>
    %9 = tpu.concatenate %7, %8 in 1 : vector<2x1x128xf32>, vector<2x15x128xf32> -> vector<2x16x128xf32>
    %cst_7 = arith.constant 0.000000e+00 : f32
    %10 = vector.broadcast %cst_7 : f32 to vector<2x1x128xf32>
    %11 = vector.extract_strided_slice %0 {offsets = [0, 1, 0], sizes = [2, 15, 128], strides = [1, 1, 1]} : vector<2x16x128xf32> to vector<2x15x128xf32>
    %12 = tpu.concatenate %11, %10 in 1 : vector<2x15x128xf32>, vector<2x1x128xf32> -> vector<2x16x128xf32>
    %13 = tpu.concatenate %9, %12 in 2 : vector<2x16x128xf32>, vector<2x16x128xf32> -> vector<2x16x256xf32>
    %14 = vector.extract_strided_slice %6 {offsets = [0, 0], sizes = [32, 128], strides = [1, 1]} : vector<32x256xf32> to vector<32x128xf32>
    %15 = vector.shape_cast %13 : vector<2x16x256xf32> to vector<32x256xf32>
    %c0_8 = arith.constant 0 : index
    %c0_9 = arith.constant 0 : index
    %16 = vector.load %arg3[%c0_8, %c0_9] : memref<256x128xf32, #tpu.memory_space<vmem>>, vector<256x128xf32>
    %cst_10 = arith.constant dense<0.000000e+00> : vector<32x128xf32>
    %17 = tpu.matmul %15, %16, %cst_10 {dimension_numbers = #tpu.dot_dimension_numbers<[1], [0], [0], [1], [0, 0, 1, 1], [], []>} : vector<32x256xf32>, vector<256x128xf32>, vector<32x128xf32> -> vector<32x128xf32>
    %18 = arith.addf %14, %17 : vector<32x128xf32>
    %cst_11 = arith.constant 0.000000e+00 : f32
    %19 = vector.broadcast %cst_11 : f32 to vector<32x128xf32>
    %20 = arith.cmpf oge, %18, %19 : vector<32x128xf32>
    %cst_12 = arith.constant 2.000000e-01 : f32
    %21 = vector.broadcast %cst_12 : f32 to vector<32x128xf32>
    %22 = arith.mulf %21, %18 : vector<32x128xf32>
    %23 = arith.select %20, %18, %22 : vector<32x128xi1>, vector<32x128xf32>
    %24 = vector.extract_strided_slice %6 {offsets = [0, 128], sizes = [32, 128], strides = [1, 1]} : vector<32x256xf32> to vector<32x128xf32>
    %25 = vector.shape_cast %23 : vector<32x128xf32> to vector<2x16x128xf32>
    %cst_13 = arith.constant 0.000000e+00 : f32
    %26 = vector.broadcast %cst_13 : f32 to vector<2x1x128xf32>
    %27 = vector.extract_strided_slice %25 {offsets = [0, 0, 0], sizes = [2, 15, 128], strides = [1, 1, 1]} : vector<2x16x128xf32> to vector<2x15x128xf32>
    %28 = tpu.concatenate %26, %27 in 1 : vector<2x1x128xf32>, vector<2x15x128xf32> -> vector<2x16x128xf32>
    %cst_14 = arith.constant 0.000000e+00 : f32
    %29 = vector.broadcast %cst_14 : f32 to vector<2x1x128xf32>
    %30 = vector.extract_strided_slice %25 {offsets = [0, 1, 0], sizes = [2, 15, 128], strides = [1, 1, 1]} : vector<2x16x128xf32> to vector<2x15x128xf32>
    %31 = tpu.concatenate %30, %29 in 1 : vector<2x15x128xf32>, vector<2x1x128xf32> -> vector<2x16x128xf32>
    %32 = tpu.concatenate %28, %31 in 2 : vector<2x16x128xf32>, vector<2x16x128xf32> -> vector<2x16x256xf32>
    %c0_15 = arith.constant 0 : index
    %c0_16 = arith.constant 0 : index
    %33 = vector.load %arg5[%c0_15, %c0_16] : memref<128x128xf32, #tpu.memory_space<vmem>>, vector<128x128xf32>
    %cst_17 = arith.constant dense<0.000000e+00> : vector<32x128xf32>
    %34 = tpu.matmul %23, %33, %cst_17 {dimension_numbers = #tpu.dot_dimension_numbers<[1], [0], [0], [1], [0, 0, 1, 1], [], []>} : vector<32x128xf32>, vector<128x128xf32>, vector<32x128xf32> -> vector<32x128xf32>
    %35 = vector.shape_cast %32 : vector<2x16x256xf32> to vector<32x256xf32>
    %c0_18 = arith.constant 0 : index
    %c0_19 = arith.constant 0 : index
    %36 = vector.load %arg6[%c0_18, %c0_19] : memref<256x128xf32, #tpu.memory_space<vmem>>, vector<256x128xf32>
    %cst_20 = arith.constant dense<0.000000e+00> : vector<32x128xf32>
    %37 = tpu.matmul %35, %36, %cst_20 {dimension_numbers = #tpu.dot_dimension_numbers<[1], [0], [0], [1], [0, 0, 1, 1], [], []>} : vector<32x256xf32>, vector<256x128xf32>, vector<32x128xf32> -> vector<32x128xf32>
    %38 = arith.addf %34, %37 : vector<32x128xf32>
    %c0_21 = arith.constant 0 : index
    %c0_22 = arith.constant 0 : index
    %39 = vector.load %arg7[%c0_21, %c0_22] : memref<1x128xf32, #tpu.memory_space<vmem>>, vector<1x128xf32>
    %40 = vector.broadcast %39 : vector<1x128xf32> to vector<32x128xf32>
    %41 = arith.addf %38, %40 : vector<32x128xf32>
    %cst_23 = arith.constant 0.000000e+00 : f32
    %42 = vector.broadcast %cst_23 : f32 to vector<32x128xf32>
    %43 = arith.cmpf oge, %41, %42 : vector<32x128xf32>
    %cst_24 = arith.constant 2.000000e-01 : f32
    %44 = vector.broadcast %cst_24 : f32 to vector<32x128xf32>
    %45 = arith.mulf %44, %41 : vector<32x128xf32>
    %46 = arith.select %43, %41, %45 : vector<32x128xi1>, vector<32x128xf32>
    %47 = arith.addf %46, %24 : vector<32x128xf32>
    %48 = vector.shape_cast %47 : vector<32x128xf32> to vector<2x16x128xf32>
    %c0_25 = arith.constant 0 : index
    %c0_26 = arith.constant 0 : index
    %c0_27 = arith.constant 0 : index
    %49 = vector.load %arg8[%c0_25, %c0_26, %c0_27] : memref<2x16x128xf32, #tpu.memory_space<vmem>>, vector<2x16x128xf32>
    tpu.vector_store %arg8[%c0_25, %c0_26, %c0_27], %48 {strides = array<i32>} : memref<2x16x128xf32, #tpu.memory_space<vmem>>, vector<2x16x128xf32>,
    %50 = vector.shape_cast %24 : vector<32x128xf32> to vector<2x16x128xf32>
    %c0_28 = arith.constant 0 : index
    %c0_29 = arith.constant 0 : index
    %c0_30 = arith.constant 0 : index
    %51 = vector.load %arg9[%c0_28, %c0_29, %c0_30] : memref<2x16x128xf32, #tpu.memory_space<vmem>>, vector<2x16x128xf32>
    tpu.vector_store %arg9[%c0_28, %c0_29, %c0_30], %50 {strides = array<i32>} : memref<2x16x128xf32, #tpu.memory_space<vmem>>, vector<2x16x128xf32>,
    return
  }
  func.func @transform_0(%arg0: i32) -> (i32, i32, i32) {
    %c0_i32 = arith.constant 0 : i32
    %c0_i32_0 = arith.constant 0 : i32
    %c0_i32_1 = arith.constant 0 : i32
    return %arg0, %c0_i32, %c0_i32_0 : i32, i32, i32
  }
  func.func @transform_1(%arg0: i32) -> (i32, i32) {
    %c0_i32 = arith.constant 0 : i32
    %c0_i32_0 = arith.constant 0 : i32
    %c0_i32_1 = arith.constant 0 : i32
    return %c0_i32, %c0_i32_0 : i32, i32
  }
  func.func @transform_2(%arg0: i32) -> (i32, i32) {
    %c0_i32 = arith.constant 0 : i32
    %c0_i32_0 = arith.constant 0 : i32
    %c0_i32_1 = arith.constant 0 : i32
    return %c0_i32, %c0_i32_0 : i32, i32
  }
  func.func @transform_3(%arg0: i32) -> (i32, i32) {
    %c0_i32 = arith.constant 0 : i32
    %c0_i32_0 = arith.constant 0 : i32
    %c0_i32_1 = arith.constant 0 : i32
    return %c0_i32, %c0_i32_0 : i32, i32
  }
  func.func @transform_4(%arg0: i32) -> (i32, i32) {
    %c0_i32 = arith.constant 0 : i32
    %c0_i32_0 = arith.constant 0 : i32
    %c0_i32_1 = arith.constant 0 : i32
    return %c0_i32, %c0_i32_0 : i32, i32
  }
  func.func @transform_5(%arg0: i32) -> (i32, i32) {
    %c0_i32 = arith.constant 0 : i32
    %c0_i32_0 = arith.constant 0 : i32
    %c0_i32_1 = arith.constant 0 : i32
    return %c0_i32, %c0_i32_0 : i32, i32
  }
  func.func @transform_6(%arg0: i32) -> (i32, i32) {
    %c0_i32 = arith.constant 0 : i32
    %c0_i32_0 = arith.constant 0 : i32
    %c0_i32_1 = arith.constant 0 : i32
    return %c0_i32, %c0_i32_0 : i32, i32
  }
  func.func @transform_7(%arg0: i32) -> (i32, i32, i32) {
    %c0_i32 = arith.constant 0 : i32
    %c0_i32_0 = arith.constant 0 : i32
    %c0_i32_1 = arith.constant 0 : i32
    return %arg0, %c0_i32, %c0_i32_0 : i32, i32, i32
  }
  func.func @transform_8(%arg0: i32) -> (i32, i32, i32) {
    %c0_i32 = arith.constant 0 : i32
    %c0_i32_0 = arith.constant 0 : i32
    %c0_i32_1 = arith.constant 0 : i32
    return %arg0, %c0_i32, %c0_i32_0 : i32, i32, i32
  }
}

module attributes {stable_mosaic.version = 11 : i64} {
  func.func @_fft_mlp_kernel(%arg0: i32, %arg1: memref<2x16x128xf32, #tpu.memory_space<vmem>>, %arg2: memref<128x128xf32, #tpu.memory_space<vmem>>, %arg3: memref<1x128xf32, #tpu.memory_space<vmem>>, %arg4: memref<128x128xf32, #tpu.memory_space<vmem>>, %arg5: memref<1x128xf32, #tpu.memory_space<vmem>>, %arg6: memref<2x16x128xf32, #tpu.memory_space<vmem>>) attributes {dimension_semantics = [#tpu.dimension_semantics<parallel>], iteration_bounds = array<i64: 1>, scalar_prefetch = 0 : i64, scratch_operands = 0 : i64, tpu.core_type = #tpu.core_type<tc>, window_params = [{transform_indices = @transform_0, window_bounds = array<i64: 2, 16, 128>}, {pipeline_mode = #tpu.pipeline_mode<synchronous>, transform_indices = @transform_1, window_bounds = array<i64: 128, 128>}, {pipeline_mode = #tpu.pipeline_mode<synchronous>, transform_indices = @transform_2, window_bounds = array<i64: 1, 128>}, {pipeline_mode = #tpu.pipeline_mode<synchronous>, transform_indices = @transform_3, window_bounds = array<i64: 128, 128>}, {pipeline_mode = #tpu.pipeline_mode<synchronous>, transform_indices = @transform_4, window_bounds = array<i64: 1, 128>}, {transform_indices = @transform_5, window_bounds = array<i64: 2, 16, 128>}]} {
    %c0 = arith.constant 0 : index
    %c0_0 = arith.constant 0 : index
    %c0_1 = arith.constant 0 : index
    %0 = vector.load %arg1[%c0, %c0_0, %c0_1] : memref<2x16x128xf32, #tpu.memory_space<vmem>>, vector<2x16x128xf32>
    %1 = vector.shape_cast %0 : vector<2x16x128xf32> to vector<32x128xf32>
    %c0_2 = arith.constant 0 : index
    %c0_3 = arith.constant 0 : index
    %2 = vector.load %arg2[%c0_2, %c0_3] : memref<128x128xf32, #tpu.memory_space<vmem>>, vector<128x128xf32>
    %cst = arith.constant dense<0.000000e+00> : vector<32x128xf32>
    %3 = tpu.matmul %1, %2, %cst {dimension_numbers = #tpu.dot_dimension_numbers<[1], [0], [0], [1], [0, 0, 1, 1], [], []>} : vector<32x128xf32>, vector<128x128xf32>, vector<32x128xf32> -> vector<32x128xf32>
    %c0_4 = arith.constant 0 : index
    %c0_5 = arith.constant 0 : index
    %4 = vector.load %arg3[%c0_4, %c0_5] : memref<1x128xf32, #tpu.memory_space<vmem>>, vector<1x128xf32>
    %5 = vector.broadcast %4 : vector<1x128xf32> to vector<32x128xf32>
    %6 = arith.addf %3, %5 : vector<32x128xf32>
    %cst_6 = arith.constant 0.000000e+00 : f32
    %7 = vector.broadcast %cst_6 : f32 to vector<32x128xf32>
    %8 = arith.cmpf oge, %6, %7 : vector<32x128xf32>
    %cst_7 = arith.constant 2.000000e-01 : f32
    %9 = vector.broadcast %cst_7 : f32 to vector<32x128xf32>
    %10 = arith.mulf %9, %6 : vector<32x128xf32>
    %11 = arith.select %8, %6, %10 : vector<32x128xi1>, vector<32x128xf32>
    %c0_8 = arith.constant 0 : index
    %c0_9 = arith.constant 0 : index
    %12 = vector.load %arg4[%c0_8, %c0_9] : memref<128x128xf32, #tpu.memory_space<vmem>>, vector<128x128xf32>
    %cst_10 = arith.constant dense<0.000000e+00> : vector<32x128xf32>
    %13 = tpu.matmul %11, %12, %cst_10 {dimension_numbers = #tpu.dot_dimension_numbers<[1], [0], [0], [1], [0, 0, 1, 1], [], []>} : vector<32x128xf32>, vector<128x128xf32>, vector<32x128xf32> -> vector<32x128xf32>
    %c0_11 = arith.constant 0 : index
    %c0_12 = arith.constant 0 : index
    %14 = vector.load %arg5[%c0_11, %c0_12] : memref<1x128xf32, #tpu.memory_space<vmem>>, vector<1x128xf32>
    %15 = vector.broadcast %14 : vector<1x128xf32> to vector<32x128xf32>
    %16 = arith.addf %13, %15 : vector<32x128xf32>
    %17 = vector.shape_cast %16 : vector<32x128xf32> to vector<2x16x128xf32>
    %c0_13 = arith.constant 0 : index
    %c0_14 = arith.constant 0 : index
    %c0_15 = arith.constant 0 : index
    %18 = vector.load %arg6[%c0_13, %c0_14, %c0_15] : memref<2x16x128xf32, #tpu.memory_space<vmem>>, vector<2x16x128xf32>
    tpu.vector_store %arg6[%c0_13, %c0_14, %c0_15], %17 {strides = array<i32>} : memref<2x16x128xf32, #tpu.memory_space<vmem>>, vector<2x16x128xf32>,
    return
  }
  func.func @transform_0(%arg0: i32) -> (i32, i32, i32) {
    %c0_i32 = arith.constant 0 : i32
    %c0_i32_0 = arith.constant 0 : i32
    %c0_i32_1 = arith.constant 0 : i32
    return %arg0, %c0_i32, %c0_i32_0 : i32, i32, i32
  }
  func.func @transform_1(%arg0: i32) -> (i32, i32) {
    %c0_i32 = arith.constant 0 : i32
    %c0_i32_0 = arith.constant 0 : i32
    %c0_i32_1 = arith.constant 0 : i32
    return %c0_i32, %c0_i32_0 : i32, i32
  }
  func.func @transform_2(%arg0: i32) -> (i32, i32) {
    %c0_i32 = arith.constant 0 : i32
    %c0_i32_0 = arith.constant 0 : i32
    %c0_i32_1 = arith.constant 0 : i32
    return %c0_i32, %c0_i32_0 : i32, i32
  }
  func.func @transform_3(%arg0: i32) -> (i32, i32) {
    %c0_i32 = arith.constant 0 : i32
    %c0_i32_0 = arith.constant 0 : i32
    %c0_i32_1 = arith.constant 0 : i32
    return %c0_i32, %c0_i32_0 : i32, i32
  }
  func.func @transform_4(%arg0: i32) -> (i32, i32) {
    %c0_i32 = arith.constant 0 : i32
    %c0_i32_0 = arith.constant 0 : i32
    %c0_i32_1 = arith.constant 0 : i32
    return %c0_i32, %c0_i32_0 : i32, i32
  }
  func.func @transform_5(%arg0: i32) -> (i32, i32, i32) {
    %c0_i32 = arith.constant 0 : i32
    %c0_i32_0 = arith.constant 0 : i32
    %c0_i32_1 = arith.constant 0 : i32
    return %arg0, %c0_i32, %c0_i32_0 : i32, i32, i32
  }
}

module attributes {stable_mosaic.version = 11 : i64} {
  func.func @_tail_kernel(%arg0: i32, %arg1: memref<2x4x512xf32, #tpu.memory_space<vmem>>, %arg2: memref<2x4x512xf32, #tpu.memory_space<vmem>>, %arg3: memref<768x128xf32, #tpu.memory_space<vmem>>, %arg4: memref<2x4x512xf32, #tpu.memory_space<vmem>>, %arg5: memref<2x4x128xf32, #tpu.memory_space<vmem>>) attributes {dimension_semantics = [#tpu.dimension_semantics<parallel>], iteration_bounds = array<i64: 1>, scalar_prefetch = 0 : i64, scratch_operands = 0 : i64, tpu.core_type = #tpu.core_type<tc>, window_params = [{transform_indices = @transform_0, window_bounds = array<i64: 2, 4, 512>}, {transform_indices = @transform_1, window_bounds = array<i64: 2, 4, 512>}, {pipeline_mode = #tpu.pipeline_mode<synchronous>, transform_indices = @transform_2, window_bounds = array<i64: 768, 128>}, {transform_indices = @transform_3, window_bounds = array<i64: 2, 4, 512>}, {transform_indices = @transform_4, window_bounds = array<i64: 2, 4, 128>}]} {
    %c0 = arith.constant 0 : index
    %c0_0 = arith.constant 0 : index
    %c0_1 = arith.constant 0 : index
    %0 = vector.load %arg1[%c0, %c0_0, %c0_1] : memref<2x4x512xf32, #tpu.memory_space<vmem>>, vector<2x4x512xf32>
    %c0_2 = arith.constant 0 : index
    %c0_3 = arith.constant 0 : index
    %c0_4 = arith.constant 0 : index
    %1 = vector.load %arg2[%c0_2, %c0_3, %c0_4] : memref<2x4x512xf32, #tpu.memory_space<vmem>>, vector<2x4x512xf32>
    %2 = arith.addf %0, %1 : vector<2x4x512xf32>
    %c0_5 = arith.constant 0 : index
    %c0_6 = arith.constant 0 : index
    %c0_7 = arith.constant 0 : index
    %3 = vector.load %arg4[%c0_5, %c0_6, %c0_7] : memref<2x4x512xf32, #tpu.memory_space<vmem>>, vector<2x4x512xf32>
    tpu.vector_store %arg4[%c0_5, %c0_6, %c0_7], %2 {strides = array<i32>} : memref<2x4x512xf32, #tpu.memory_space<vmem>>, vector<2x4x512xf32>,
    %4 = vector.extract_strided_slice %2 {offsets = [0, 0, 384], sizes = [2, 4, 128], strides = [1, 1, 1]} : vector<2x4x512xf32> to vector<2x4x128xf32>
    %cst = arith.constant 0.000000e+00 : f32
    %5 = vector.broadcast %cst : f32 to vector<2x1x128xf32>
    %6 = vector.extract_strided_slice %4 {offsets = [0, 0, 0], sizes = [2, 3, 128], strides = [1, 1, 1]} : vector<2x4x128xf32> to vector<2x3x128xf32>
    %7 = tpu.concatenate %5, %6 in 1 : vector<2x1x128xf32>, vector<2x3x128xf32> -> vector<2x4x128xf32>
    %8 = vector.extract_strided_slice %2 {offsets = [0, 0, 0], sizes = [2, 4, 128], strides = [1, 1, 1]} : vector<2x4x512xf32> to vector<2x4x128xf32>
    %cst_8 = arith.constant 0.000000e+00 : f32
    %9 = vector.broadcast %cst_8 : f32 to vector<2x1x128xf32>
    %10 = vector.extract_strided_slice %8 {offsets = [0, 1, 0], sizes = [2, 3, 128], strides = [1, 1, 1]} : vector<2x4x128xf32> to vector<2x3x128xf32>
    %11 = tpu.concatenate %10, %9 in 1 : vector<2x3x128xf32>, vector<2x1x128xf32> -> vector<2x4x128xf32>
    %12 = tpu.concatenate %7, %2, %11 in 2 : vector<2x4x128xf32>, vector<2x4x512xf32>, vector<2x4x128xf32> -> vector<2x4x768xf32>
    %c0_9 = arith.constant 0 : index
    %c0_10 = arith.constant 0 : index
    %13 = vector.load %arg3[%c0_9, %c0_10] : memref<768x128xf32, #tpu.memory_space<vmem>>, vector<768x128xf32>
    %14 = vector.extract_strided_slice %12 {offsets = [0, 0, 0], sizes = [1, 4, 768], strides = [1, 1, 1]} : vector<2x4x768xf32> to vector<1x4x768xf32>
    %15 = vector.shape_cast %14 : vector<1x4x768xf32> to vector<4x768xf32>
    %cst_11 = arith.constant dense<0.000000e+00> : vector<4x128xf32>
    %16 = tpu.matmul %15, %13, %cst_11 {dimension_numbers = #tpu.dot_dimension_numbers<[1], [0], [0], [1], [0, 0, 1, 1], [], []>} : vector<4x768xf32>, vector<768x128xf32>, vector<4x128xf32> -> vector<4x128xf32>
    %c0_12 = arith.constant 0 : index
    %c0_13 = arith.constant 0 : index
    %c0_14 = arith.constant 0 : index
    %17 = vector.load %arg5[%c0_12, %c0_13, %c0_14] : memref<2x4x128xf32, #tpu.memory_space<vmem>>, vector<1x4x128xf32>
    %18 = vector.shape_cast %17 : vector<1x4x128xf32> to vector<4x128xf32>
    %19 = vector.shape_cast %16 : vector<4x128xf32> to vector<1x4x128xf32>
    tpu.vector_store %arg5[%c0_12, %c0_13, %c0_14], %19 {strides = array<i32>} : memref<2x4x128xf32, #tpu.memory_space<vmem>>, vector<1x4x128xf32>,
    %20 = vector.extract_strided_slice %12 {offsets = [1, 0, 0], sizes = [1, 4, 768], strides = [1, 1, 1]} : vector<2x4x768xf32> to vector<1x4x768xf32>
    %21 = vector.shape_cast %20 : vector<1x4x768xf32> to vector<4x768xf32>
    %cst_15 = arith.constant dense<0.000000e+00> : vector<4x128xf32>
    %22 = tpu.matmul %21, %13, %cst_15 {dimension_numbers = #tpu.dot_dimension_numbers<[1], [0], [0], [1], [0, 0, 1, 1], [], []>} : vector<4x768xf32>, vector<768x128xf32>, vector<4x128xf32> -> vector<4x128xf32>
    %c1 = arith.constant 1 : index
    %c0_16 = arith.constant 0 : index
    %c0_17 = arith.constant 0 : index
    %23 = vector.load %arg5[%c1, %c0_16, %c0_17] : memref<2x4x128xf32, #tpu.memory_space<vmem>>, vector<1x4x128xf32>
    %24 = vector.shape_cast %23 : vector<1x4x128xf32> to vector<4x128xf32>
    %25 = vector.shape_cast %22 : vector<4x128xf32> to vector<1x4x128xf32>
    tpu.vector_store %arg5[%c1, %c0_16, %c0_17], %25 {strides = array<i32>} : memref<2x4x128xf32, #tpu.memory_space<vmem>>, vector<1x4x128xf32>,
    return
  }
  func.func @transform_0(%arg0: i32) -> (i32, i32, i32) {
    %c0_i32 = arith.constant 0 : i32
    %c0_i32_0 = arith.constant 0 : i32
    %c0_i32_1 = arith.constant 0 : i32
    return %arg0, %c0_i32, %c0_i32_0 : i32, i32, i32
  }
  func.func @transform_1(%arg0: i32) -> (i32, i32, i32) {
    %c0_i32 = arith.constant 0 : i32
    %c0_i32_0 = arith.constant 0 : i32
    %c0_i32_1 = arith.constant 0 : i32
    return %arg0, %c0_i32, %c0_i32_0 : i32, i32, i32
  }
  func.func @transform_2(%arg0: i32) -> (i32, i32) {
    %c0_i32 = arith.constant 0 : i32
    %c0_i32_0 = arith.constant 0 : i32
    %c0_i32_1 = arith.constant 0 : i32
    return %c0_i32, %c0_i32_0 : i32, i32
  }
  func.func @transform_3(%arg0: i32) -> (i32, i32, i32) {
    %c0_i32 = arith.constant 0 : i32
    %c0_i32_0 = arith.constant 0 : i32
    %c0_i32_1 = arith.constant 0 : i32
    return %arg0, %c0_i32, %c0_i32_0 : i32, i32, i32
  }
  func.func @transform_4(%arg0: i32) -> (i32, i32, i32) {
    %c0_i32 = arith.constant 0 : i32
    %c0_i32_0 = arith.constant 0 : i32
    %c0_i32_1 = arith.constant 0 : i32
    return %arg0, %c0_i32, %c0_i32_0 : i32, i32, i32
  }
}

</mosaic_0001>

<bundles_post_ra>
// kernel: fftconvblock_forward.3
= control target key start
LH: loop header
LB: loop body
LE: loop exit
PB: predicated region body
PF: predicated region fallthrough
CT: control target
= control target key end

     0   :  { %14 = vsyncpa [#allocation3], 0  ;;  %s817_s27 = smov [#allocation2]   ;;  %s1244_s0 = inlined_call_operand.vmem [shape: f32[2,16,128], index: 0, kind: input, shape index: {}]   ;;  %s1245_s1 = inlined_call_operand.vmem [shape: f32[128,256], index: 1, kind: input, shape index: {}]   ;;  %s1246_s2 = inlined_call_operand.vmem [shape: f32[256,128], index: 2, kind: input, shape index: {}]   ;;  %s1247_s3 = inlined_call_operand.vmem [shape: f32[1,256], index: 3, kind: input, shape index: {}]   ;;  %s1248_s4 = inlined_call_operand.hbm [shape: f32[128,128], index: 4, kind: input, shape index: {}]   ;;  %s1249_s5 = inlined_call_operand.vmem [shape: f32[256,128], index: 5, kind: input, shape index: {}]   ;;  %s1250_s6 = inlined_call_operand.vmem [shape: f32[1,128], index: 6, kind: input, shape index: {}]   ;;  %s1251_s7 = inlined_call_operand.vmem [shape: f32[2,16,128], index: 7, kind: output, shape index: {0}]   ;;  %s1252_s8 = inlined_call_operand.vmem [shape: f32[2,16,128], index: 8, kind: output, shape index: {1}]  }
   0x1   :  { %s28_s28 = sshll.u32 %s817_s27, 4  ;;  %s29_s28 = int_to_ptr.vmem [resolvable:$true] %s28_s28 }
   0x2   :  { %s803_s29 = scalar_lea.vmem %s29_s28, 2048  ;;  %p808_p1 = scmp.lt.s32.totalorder %s29_s28, %s29_s28 }
   0x3   :  { %p804_p0 = scmp.ne.s32.totalorder %s29_s28, %s803_s29  ;;  %p809_p2 = scmp.lt.s32.totalorder %s803_s29, %s803_s29 }
   0x5   :  { %p810_p3 = por %p809_p2, %p808_p1 }
   0x7   :  { %p811_p4 = pnand %p810_p3, %p804_p0 }
   0x9   :  { %814 = shalt.err (!%p811_p4)
}
   0xa   :  { %s818_s30 = smov 128   ;;  %s819_s9 = smov 8  }
   0xb   :  { %34 = dma.hbm_to_vmem [thread:$0]  %s1248_s4, 2048, %s29_s28, [#allocation3], %s818_s30, %s818_s30, %s819_s9  }
   0xc   :  { %815 = dma.done.wait [#allocation3], 2048  }
   0xd   :  { %816 = vsyncadd [#allocation3], 4294965248  ;;  %v820_v0 = vmov 0.0   ;;  %v77_v1 = vld [vmem:[%s1245_s1 + $0xf8] sm:$0xff]  ;;  %v76_v3 = vld [vmem:[%s1245_s1 + $0xf0] sm:$0xff]  ;;  %vm196_vm0 = vcmask 1046528  }
   0xe   :  { %154 = vmatprep.mubr.f32.mxu0 %v820_v0  ;;  %v240_v2 = vld [vmem:[%s1246_s2 + $0xf8] sm:$0xff]  ;;  %90 = vmatprep.subr.mxu0 %v77_v1  ;;  %v75_v5 = vld [vmem:[%s1245_s1 + $0xe8] sm:$0xff]  ;;  %v239_v6 = vld [vmem:[%s1246_s2 + $0xf0] sm:$0xff]  ;;  %vm183_vm1 = vcmask 1040384  }
   0xf   :  { %645 = vmatprep.subr.mxu1 %v240_v2  ;;  %v224_v4 = vld [vmem:[%s1246_s2 + $0x78] sm:$0xff]  ;;  %91 = vmatpush1.msra.mxu0 %v76_v3  ;;  %v74_v7 = vld [vmem:[%s1245_s1 + $0xe0] sm:$0xff]  ;;  %v223_v8 = vld [vmem:[%s1246_s2 + $0x70] sm:$0xff] }
  0x10   :  { %646 = vmatpush3.msra.mxu1 %v224_v4  ;;  %v73_v9 = vld [vmem:[%s1245_s1 + $0xd8] sm:$0xff]  ;;  %92 = vmatprep.subr.mxu0 %v75_v5  ;;  %v238_v10 = vld [vmem:[%s1246_s2 + $0xe8] sm:$0xff]  ;;  %v72_v11 = vld [vmem:[%s1245_s1 + $0xd0] sm:$0xff] }
  0x11   :  { %647 = vmatprep.subr.mxu1 %v239_v6  ;;  %v222_v12 = vld [vmem:[%s1246_s2 + $0x68] sm:$0xff]  ;;  %93 = vmatpush1.msra.mxu0 %v74_v7  ;;  %v237_v14 = vld [vmem:[%s1246_s2 + $0xe0] sm:$0xff]  ;;  %v69_v17 = vld [vmem:[%s1245_s1 + $0xb8] sm:$0xff] }
  0x12   :  { %648 = vmatpush3.msra.mxu1 %v223_v8  ;;  %v71_v13 = vld [vmem:[%s1245_s1 + $0xc8] sm:$0xff]  ;;  %94 = vmatprep.subr.mxu0 %v73_v9  ;;  %v70_v15 = vld [vmem:[%s1245_s1 + $0xc0] sm:$0xff]  ;;  %v236_v18 = vld [vmem:[%s1246_s2 + $0xd8] sm:$0xff] }
  0x13   :  { %649 = vmatprep.subr.mxu1 %v238_v10  ;;  %v221_v16 = vld [vmem:[%s1246_s2 + $0x60] sm:$0xff]  ;;  %95 = vmatpush1.msra.mxu0 %v72_v11  ;;  %v68_v19 = vld [vmem:[%s1245_s1 + $0xb0] sm:$0xff]  ;;  %v220_v20 = vld [vmem:[%s1246_s2 + $0x58] sm:$0xff] }
  0x14   :  { %650 = vmatpush3.msra.mxu1 %v222_v12  ;;  %96 = vmatprep.subr.mxu0 %v71_v13  ;;  %v67_v21 = vld [vmem:[%s1245_s1 + $0xa8] sm:$0xff]  ;;  %v235_v22 = vld [vmem:[%s1246_s2 + $0xd0] sm:$0xff]  ;;  %v66_v23 = vld [vmem:[%s1245_s1 + $0xa0] sm:$0xff] }
  0x15   :  { %651 = vmatprep.subr.mxu1 %v237_v14  ;;  %97 = vmatpush1.msra.mxu0 %v70_v15  ;;  %v219_v24 = vld [vmem:[%s1246_s2 + $0x50] sm:$0xff]  ;;  %v65_v25 = vld [vmem:[%s1245_s1 + $0x98] sm:$0xff]  ;;  %v234_v26 = vld [vmem:[%s1246_s2 + $0xc8] sm:$0xff] }
  0x16   :  { %652 = vmatpush3.msra.mxu1 %v221_v16  ;;  %98 = vmatprep.subr.mxu0 %v69_v17  ;;  %v64_v27 = vld [vmem:[%s1245_s1 + $0x90] sm:$0xff]  ;;  %v218_v28 = vld [vmem:[%s1246_s2 + $0x48] sm:$0xff]  ;;  %v233_v30 = vld [vmem:[%s1246_s2 + $0xc0] sm:$0xff] }
  0x17   :  { %653 = vmatprep.subr.mxu1 %v236_v18  ;;  %99 = vmatpush1.msra.mxu0 %v68_v19  ;;  %v63_v29 = vld [vmem:[%s1245_s1 + $0x88] sm:$0xff]  ;;  %v62_v31 = vld [vmem:[%s1245_s1 + $0x80] sm:$0xff]  ;;  %v61_v33 = vld [vmem:[%s1245_s1 + $0x78] sm:$0xff] }
  0x18   :  { %654 = vmatpush3.msra.mxu1 %v220_v20  ;;  %100 = vmatprep.subr.mxu0 %v67_v21  ;;  %v217_v32 = vld [vmem:[%s1246_s2 + $0x40] sm:$0xff]  ;;  %v232_v34 = vld [vmem:[%s1246_s2 + $0xb8] sm:$0xff]  ;;  %v60_v35 = vld [vmem:[%s1245_s1 + $0x70] sm:$0xff] }
  0x19   :  { %655 = vmatprep.subr.mxu1 %v235_v22  ;;  %101 = vmatpush1.msra.mxu0 %v66_v23  ;;  %v216_v36 = vld [vmem:[%s1246_s2 + $0x38] sm:$0xff]  ;;  %v59_v37 = vld [vmem:[%s1245_s1 + $0x68] sm:$0xff]  ;;  %v231_v38 = vld [vmem:[%s1246_s2 + $0xb0] sm:$0xff] }
  0x1a   :  { %656 = vmatpush3.msra.mxu1 %v219_v24  ;;  %102 = vmatprep.subr.mxu0 %v65_v25  ;;  %v58_v39 = vld [vmem:[%s1245_s1 + $0x60] sm:$0xff]  ;;  %v215_v40 = vld [vmem:[%s1246_s2 + $0x30] sm:$0xff]  ;;  %v57_v41 = vld [vmem:[%s1245_s1 + $0x58] sm:$0xff] }
  0x1b   :  { %657 = vmatprep.subr.mxu1 %v234_v26  ;;  %103 = vmatpush1.msra.mxu0 %v64_v27  ;;  %v230_v42 = vld [vmem:[%s1246_s2 + $0xa8] sm:$0xff]  ;;  %v56_v43 = vld [vmem:[%s1245_s1 + $0x50] sm:$0xff]  ;;  %v229_v46 = vld [vmem:[%s1246_s2 + $0xa0] sm:$0xff] }
  0x1c   :  { %658 = vmatpush3.msra.mxu1 %v218_v28  ;;  %104 = vmatprep.subr.mxu0 %v63_v29  ;;  %v214_v44 = vld [vmem:[%s1246_s2 + $0x28] sm:$0xff]  ;;  %v54_v47 = vld [vmem:[%s1245_s1 + $0x40] sm:$0xff]  ;;  %v53_v49 = vld [vmem:[%s1245_s1 + $0x38] sm:$0xff] }
  0x1d   :  { %659 = vmatprep.subr.mxu1 %v233_v30  ;;  %105 = vmatpush1.msra.mxu0 %v62_v31  ;;  %v55_v45 = vld [vmem:[%s1245_s1 + $0x48] sm:$0xff]  ;;  %v213_v48 = vld [vmem:[%s1246_s2 + $0x20] sm:$0xff]  ;;  %v228_v50 = vld [vmem:[%s1246_s2 + $0x98] sm:$0xff] }
  0x1e   :  { %660 = vmatpush3.msra.mxu1 %v217_v32  ;;  %106 = vmatprep.subr.mxu0 %v61_v33  ;;  %v52_v51 = vld [vmem:[%s1245_s1 + $0x30] sm:$0xff]  ;;  %v212_v52 = vld [vmem:[%s1246_s2 + $0x18] sm:$0xff]  ;;  %v42_v53 = vld [vmem:[%s1244_s0] sm:$0xff] }
  0x1f   :  { %661 = vmatprep.subr.mxu1 %v232_v34  ;;  %107 = vmatpush1.msra.mxu0 %v60_v35  ;;  %v43_v54 = vld [vmem:[%s1244_s0 + $0x8] sm:$0xff]  ;;  %v227_v56 = vld [vmem:[%s1246_s2 + $0x90] sm:$0xff]  ;;  %v50_v57 = vld [vmem:[%s1245_s1 + $0x20] sm:$0xff]  ;;  %v197_v61 = vrot.slane %v42_v53, 1  ;;  %v184_v9 = vrot.slane %v42_v53, 7 }
  0x20   :  { %662 = vmatpush3.msra.mxu1 %v216_v36  ;;  %108 = vmatprep.subr.mxu0 %v59_v37  ;;  %v51_v55 = vld [vmem:[%s1245_s1 + $0x28] sm:$0xff]  ;;  %v211_v58 = vld [vmem:[%s1246_s2 + $0x10] sm:$0xff]  ;;  %v49_v59 = vld [vmem:[%s1245_s1 + $0x18] sm:$0xff]  ;;  %v198_v62 = vrot.slane %v43_v54, 1  ;;  %v185_v11 = vrot.slane %v43_v54, 7 }
  0x21   :  { %663 = vmatprep.subr.mxu1 %v231_v38  ;;  %109 = vmatpush1.msra.mxu0 %v58_v39  ;;  %v226_v60 = vld [vmem:[%s1246_s2 + $0x88] sm:$0xff]  ;;  %v48_v63 = vld [vmem:[%s1245_s1 + $0x10] sm:$0xff]  ;;  %v225_v3 = vld [vmem:[%s1246_s2 + $0x80] sm:$0xff] }
  0x22   :  { %664 = vmatpush3.msra.mxu1 %v215_v40  ;;  %110 = vmatprep.subr.mxu0 %v57_v41  ;;  %v210_v1 = vld [vmem:[%s1246_s2 + $0x8] sm:$0xff]  ;;  %v46_v4 = vld [vmem:[%s1245_s1] sm:$0xff]  ;;  %v44_v6 = vld [vmem:[%s1244_s0 + $0x10] sm:$0xff]  ;;  %v199_v8 = vsel %vm196_vm0, %v197_v61, %v198_v62  ;;  %v186_v17 = vsel %vm183_vm1, %v184_v9, %v185_v11 }
  0x23   :  { %665 = vmatprep.subr.mxu1 %v230_v42  ;;  %111 = vmatpush1.msra.mxu0 %v56_v43  ;;  %v47_v2 = vld [vmem:[%s1245_s1 + $0x8] sm:$0xff]  ;;  %v209_v5 = vld [vmem:[%s1246_s2] sm:$0xff]  ;;  %v45_v7 = vld [vmem:[%s1244_s0 + $0x18] sm:$0xff]  ;;  %v200_v12 = vrot.slane %v44_v6, 1  ;;  %v187_v21 = vrot.slane %v44_v6, 7 }
  0x24   :  { %666 = vmatpush3.msra.mxu1 %v214_v44  ;;  %112 = vmatprep.subr.mxu0 %v55_v45  ;;  %vm1076_vm2 = vmneg %vm183_vm1  ;;  %v201_v13 = vrot.slane %v45_v7, 1  ;;  %v385_v14 = vld [vmem:[#allocation2 + $0x78] sm:$0xff]  ;;  %v384_v16 = vld [vmem:[#allocation2 + $0x70] sm:$0xff]  ;;  %v188_v22 = vrot.slane %v45_v7, 7 }
  0x25   :  { %667 = vmatprep.subr.mxu1 %v229_v46  ;;  %113 = vmatpush1.msra.mxu0 %v54_v47  ;;  %v417_v15 = vld [vmem:[%s1249_s5 + $0xf8] sm:$0xff]  ;;  %v383_v19 = vld [vmem:[#allocation2 + $0x68] sm:$0xff]  ;;  %v416_v23 = vld [vmem:[%s1249_s5 + $0xf0] sm:$0xff] }
  0x26   :  { %668 = vmatpush3.msra.mxu1 %v213_v48  ;;  %114 = vmatprep.subr.mxu0 %v53_v49  ;;  %v202_v18 = vsel %vm196_vm0, %v200_v12, %v201_v13  ;;  %v401_v20 = vld [vmem:[%s1249_s5 + $0x78] sm:$0xff]  ;;  %v382_v24 = vld [vmem:[#allocation2 + $0x60] sm:$0xff]  ;;  %v400_v25 = vld [vmem:[%s1249_s5 + $0x70] sm:$0xff]  ;;  %v189_v26 = vsel %vm183_vm1, %v187_v21, %v188_v22 }
  0x27   :  { %669 = vmatprep.subr.mxu1 %v228_v50  ;;  %115 = vmatpush1.msra.mxu0 %v52_v51  ;;  %v415_v27 = vld [vmem:[%s1249_s5 + $0xe8] sm:$0xff]  ;;  %v381_v28 = vld [vmem:[#allocation2 + $0x58] sm:$0xff]  ;;  %v380_v30 = vld [vmem:[#allocation2 + $0x50] sm:$0xff] }
  0x28   :  { %670 = vmatpush3.msra.mxu1 %v212_v52  ;;  %116 = vmatprep.subr.mxu0 %v51_v55  ;;  %v399_v29 = vld [vmem:[%s1249_s5 + $0x68] sm:$0xff]  ;;  %v398_v31 = vld [vmem:[%s1249_s5 + $0x60] sm:$0xff]  ;;  %v413_v32 = vld [vmem:[%s1249_s5 + $0xd8] sm:$0xff] }
  0x29   :  { %671 = vmatprep.subr.mxu1 %v227_v56  ;;  %117 = vmatpush1.msra.mxu0 %v50_v57  ;;  %v379_v33 = vld [vmem:[#allocation2 + $0x48] sm:$0xff]  ;;  %v397_v34 = vld [vmem:[%s1249_s5 + $0x58] sm:$0xff]  ;;  %v412_v35 = vld [vmem:[%s1249_s5 + $0xd0] sm:$0xff] }
  0x2a   :  { %672 = vmatpush3.msra.mxu1 %v211_v58  ;;  %118 = vmatprep.subr.mxu0 %v49_v59  ;;  %v378_v36 = vld [vmem:[#allocation2 + $0x40] sm:$0xff]  ;;  %v396_v37 = vld [vmem:[%s1249_s5 + $0x50] sm:$0xff]  ;;  %v411_v38 = vld [vmem:[%s1249_s5 + $0xc8] sm:$0xff] }
  0x2b   :  { %673 = vmatprep.subr.mxu1 %v226_v60  ;;  %119 = vmatpush1.msra.mxu0 %v48_v63  ;;  %v377_v39 = vld [vmem:[#allocation2 + $0x38] sm:$0xff]  ;;  %v395_v40 = vld [vmem:[%s1249_s5 + $0x48] sm:$0xff]  ;;  %v410_v41 = vld [vmem:[%s1249_s5 + $0xc0] sm:$0xff] }
  0x2c   :  { %674 = vmatpush3.msra.mxu1 %v210_v1  ;;  %120 = vmatprep.subr.mxu0 %v47_v2  ;;  %v376_v42 = vld [vmem:[#allocation2 + $0x30] sm:$0xff]  ;;  %v394_v43 = vld [vmem:[%s1249_s5 + $0x40] sm:$0xff]  ;;  %v409_v44 = vld [vmem:[%s1249_s5 + $0xb8] sm:$0xff] }
  0x2d   :  { %675 = vmatprep.subr.mxu1 %v225_v3  ;;  %121 = vmatpush1.msra.mxu0 %v46_v4  ;;  %v375_v45 = vld [vmem:[#allocation2 + $0x28] sm:$0xff]  ;;  %v393_v46 = vld [vmem:[%s1249_s5 + $0x38] sm:$0xff]  ;;  %v408_v47 = vld [vmem:[%s1249_s5 + $0xb0] sm:$0xff]  ;;  %v80_v3 = vlaneseq }
  0x2e   :  { %676 = vmatpush3.msra.mxu1 %v209_v5  ;;  %305 = vmatprep.mubr.f32.mxu1 %v199_v8  ;;  %v374_v48 = vld [vmem:[#allocation2 + $0x20] sm:$0xff]  ;;  %v392_v49 = vld [vmem:[%s1249_s5 + $0x30] sm:$0xff]  ;;  %v407_v50 = vld [vmem:[%s1249_s5 + $0xa8] sm:$0xff] }
  0x2f   :  { %155 = vmatmul.mubr.f32.vlgmr.msra.gmra.mxu0 %v42_v53  ;;  %633 = vmatmul.mubr.msk.f32.vlgmr.msra.gmra.mxu1 %vm1076_vm2, %v184_v9  ;;  %v373_v51 = vld [vmem:[#allocation2 + $0x18] sm:$0xff]  ;;  %v391_v52 = vld [vmem:[%s1249_s5 + $0x28] sm:$0xff]  ;;  %v406_v53 = vld [vmem:[%s1249_s5 + $0xa0] sm:$0xff]  ;;  %v81_v4 = vshrl.u32 %v80_v3, 7 }
  0x30   :  { %160 = vmatprep.mubr.f32.mxu0 %v820_v0  ;;  %634 = vmatprep.mubr.msk.f32.mxu1 %vm196_vm0, %v198_v62  ;;  %v390_v55 = vld [vmem:[%s1249_s5 + $0x20] sm:$0xff]  ;;  %v405_v56 = vld [vmem:[%s1249_s5 + $0x98] sm:$0xff]  ;;  %v371_v57 = vld [vmem:[#allocation2 + $0x8] sm:$0xff] }
  0x31   :  { %753 = vmatprep.subr.mxu1 %v385_v14  ;;  %689 = vmatprep.subr.mxu0 %v417_v15  ;;  %v389_v58 = vld [vmem:[%s1249_s5 + $0x18] sm:$0xff]  ;;  %v404_v59 = vld [vmem:[%s1249_s5 + $0x90] sm:$0xff]  ;;  %v370_v60 = vld [vmem:[#allocation2] sm:$0xff]  ;;  %v82_v5 = vsub.s32 0, %v81_v4 }
  0x32   :  { %754 = vmatpush3.msra.mxu1 %v385_v14  ;;  %690 = vmatpush3.msra.mxu0 %v401_v20  ;;  %v388_v61 = vld [vmem:[%s1249_s5 + $0x10] sm:$0xff]  ;;  %v403_v62 = vld [vmem:[%s1249_s5 + $0x88] sm:$0xff]  ;;  %v402_v1 = vld [vmem:[%s1249_s5 + $0x80] sm:$0xff] }
  0x33   :  { %161 = vmatmul.mubr.f32.gmra.mxu0 %v43_v54  ;;  %755 = vmatprep.subr.mxu1 %v384_v16  ;;  %v372_v54 = vld [vmem:[#allocation2 + $0x10] sm:$0xff]  ;;  %v387_v63 = vld [vmem:[%s1249_s5 + $0x8] sm:$0xff]  ;;  %v386_v2 = vld [vmem:[%s1249_s5] sm:$0xff] }
  0x34   :  { %311 = vmatmul.mubr.f32.gmra.mxu1 %v186_v17  ;;  %166 = vmatprep.mubr.f32.mxu0 %v820_v0 }
  0x35   :  { %315 = vmatprep.mubr.f32.mxu1 %v202_v18  ;;  %756 = vmatpush3.msra.mxu1 %v384_v16 }
  0x36   :  { %757 = vmatprep.subr.mxu1 %v383_v19  ;;  %691 = vmatprep.subr.mxu0 %v416_v23 }
  0x37   :  { %167 = vmatmul.mubr.f32.gmra.mxu0 %v44_v6  ;;  %758 = vmatpush3.msra.mxu1 %v383_v19  ;;  %v78_v6 = vld [vmem:[%s1247_s3] sm:$0x3] }
  0x38   :  { %636 = vmatmul.mubr.msk.f32.gmra.mxu1 %vm1076_vm2, %v187_v21  ;;  %172 = vmatprep.mubr.f32.mxu0 %v820_v0  ;;  %v414_v0 = vld [vmem:[%s1249_s5 + $0xe0] sm:$0xff]  ;;  %v83_v8 = vrot.slane %v78_v6, %v82_v5 }
  0x39   :  { %637 = vmatprep.mubr.msk.f32.mxu1 %vm196_vm0, %v201_v13  ;;  %759 = vmatprep.subr.mxu1 %v382_v24 }
  0x3a   :  { %692 = vmatpush3.msra.mxu0 %v400_v25  ;;  %760 = vmatpush3.msra.mxu1 %v382_v24 }
  0x3b   :  { %173 = vmatmul.mubr.f32.gmra.mxu0 %v45_v7  ;;  %693 = vmatprep.subr.mxu0 %v415_v27  ;;  %v86_v7 = vsub.s32 1, %v81_v4  ;;  %v644_v4 = vld [vmem:[%s1250_s6] ss:$0 sm:$0xff] }
  0x3c   :  { %321 = vmatmul.mubr.f32.gmra.mxu1 %v189_v26  ;;  %761 = vmatprep.subr.mxu1 %v381_v28 }
  0x3d   :  { %694 = vmatpush3.msra.mxu0 %v399_v29  ;;  %762 = vmatpush3.msra.mxu1 %v381_v28  ;;  %v87_v9 = vrot.slane %v78_v6, %v86_v7 }
  0x3e   :  { %695 = vmatprep.subr.mxu0 %v414_v0  ;;  %763 = vmatprep.subr.mxu1 %v380_v30 }
  0x3f   :  { %696 = vmatpush3.msra.mxu0 %v398_v31  ;;  %764 = vmatpush3.msra.mxu1 %v380_v30 }
  0x40   :  { %697 = vmatprep.subr.mxu0 %v413_v32  ;;  %765 = vmatprep.subr.mxu1 %v379_v33 }
  0x41   :  { %698 = vmatpush3.msra.mxu0 %v397_v34  ;;  %766 = vmatpush3.msra.mxu1 %v379_v33 }
  0x42   :  { %699 = vmatprep.subr.mxu0 %v412_v35  ;;  %767 = vmatprep.subr.mxu1 %v378_v36 }
  0x43   :  { %700 = vmatpush3.msra.mxu0 %v396_v37  ;;  %768 = vmatpush3.msra.mxu1 %v378_v36 }
  0x44   :  { %701 = vmatprep.subr.mxu0 %v411_v38  ;;  %769 = vmatprep.subr.mxu1 %v377_v39 }
  0x45   :  { %702 = vmatpush3.msra.mxu0 %v395_v40  ;;  %770 = vmatpush3.msra.mxu1 %v377_v39 }
  0x46   :  { %703 = vmatprep.subr.mxu0 %v410_v41  ;;  %771 = vmatprep.subr.mxu1 %v376_v42 }
  0x47   :  { %704 = vmatpush3.msra.mxu0 %v394_v43  ;;  %772 = vmatpush3.msra.mxu1 %v376_v42 }
  0x48   :  { %705 = vmatprep.subr.mxu0 %v409_v44  ;;  %773 = vmatprep.subr.mxu1 %v375_v45 }
  0x49   :  { %706 = vmatpush3.msra.mxu0 %v393_v46  ;;  %774 = vmatpush3.msra.mxu1 %v375_v45 }
  0x4a   :  { %707 = vmatprep.subr.mxu0 %v408_v47  ;;  %775 = vmatprep.subr.mxu1 %v374_v48 }
  0x4b   :  { %708 = vmatpush3.msra.mxu0 %v392_v49  ;;  %776 = vmatpush3.msra.mxu1 %v374_v48 }
  0x4c   :  { %709 = vmatprep.subr.mxu0 %v407_v50  ;;  %777 = vmatprep.subr.mxu1 %v373_v51 }
  0x4d   :  { %710 = vmatpush3.msra.mxu0 %v391_v52  ;;  %778 = vmatpush3.msra.mxu1 %v373_v51 }
  0x4e   :  { %711 = vmatprep.subr.mxu0 %v406_v53  ;;  %779 = vmatprep.subr.mxu1 %v372_v54 }
  0x4f   :  { %712 = vmatpush3.msra.mxu0 %v390_v55  ;;  %780 = vmatpush3.msra.mxu1 %v372_v54 }
  0x50   :  { %713 = vmatprep.subr.mxu0 %v405_v56  ;;  %781 = vmatprep.subr.mxu1 %v371_v57 }
  0x51   :  { %714 = vmatpush3.msra.mxu0 %v389_v58  ;;  %782 = vmatpush3.msra.mxu1 %v371_v57 }
  0x52   :  { %715 = vmatprep.subr.mxu0 %v404_v59  ;;  %783 = vmatprep.subr.mxu1 %v370_v60 }
  0x53   :  { %716 = vmatpush3.msra.mxu0 %v388_v61  ;;  %784 = vmatpush3.msra.mxu1 %v370_v60 }
  0x54   :  { %717 = vmatprep.subr.mxu0 %v403_v62 }
  0x55   :  { %718 = vmatpush3.msra.mxu0 %v387_v63 }
  0x56   :  { %719 = vmatprep.subr.mxu0 %v402_v1 }
  0x57   :  { %720 = vmatpush3.msra.mxu0 %v386_v2 }
  0xef   :  { %v156_v11 = vpop.f32.mrf.mxu0  ;;  %v677_v12 = vpop.f32.mrf.mxu1 }
  0xf0   :  { %v157_v13 = vadd.f32 %v156_v11, %v83_v8 }
  0xf1   :  { %v158_v14 = vpop.f32.mrf.mxu0  ;;  %v678_v16 = vpop.f32.mrf.mxu1 }
  0xf2   :  { %v1191_v15 = vadd.f32 %v158_v14, %v87_v9  ;;  %v679_v17 = vadd.f32 %v678_v16, %v677_v12 }
  0xf3   :  { %v162_v18 = vpop.f32.mrf.mxu0 }
  0xf4   :  { %619 = vst [vmem:[%s1252_s8] sm:$0xff] %v1191_v15  ;;  %v680_v19 = vpop.f32.mrf.mxu1  ;;  %v326_v20 = vadd.f32 %v679_v17, %v157_v13  ;;  %v163_v21 = vadd.f32 %v162_v18, %v83_v8 }
  0xf5   :  { %v164_v22 = vpop.f32.mrf.mxu0 }
  0xf6   :  { %v1197_v23 = vadd.f32 %v164_v22, %v87_v9  ;;  %v681_v24 = vpop.f32.mrf.mxu1  ;;  %vm330_vm3 = vcmp.ge.f32.partialorder %v326_v20, 0.0  ;;  %v334_v27 = vmul.f32 0.2, %v326_v20 }
  0xf7   :  { %v682_v25 = vadd.f32 %v681_v24, %v680_v19  ;;  %v168_v26 = vpop.f32.mrf.mxu0 }
  0xf8   :  { %620 = vst [vmem:[%s1252_s8 + $0x8] sm:$0xff] %v1197_v23  ;;  %v683_v28 = vpop.f32.mrf.mxu1  ;;  %v169_v0 = vadd.f32 %v168_v26, %v83_v8  ;;  %v338_v31 = vsel %vm330_vm3, %v326_v20, %v334_v27 }
  0xf9   :  { %v327_v29 = vadd.f32 %v682_v25, %v163_v21  ;;  %v170_v30 = vpop.f32.mrf.mxu0  ;;  %785 = vmatprep.mubr.f32.mxu1 %v338_v31  ;;  %v358_v42 = vrot.slane %v338_v31, 1  ;;  %v346_v48 = vrot.slane %v338_v31, 7 }
  0xfa   :  { %v1203_v32 = vadd.f32 %v170_v30, %v87_v9  ;;  %v684_v33 = vpop.f32.mrf.mxu1 }
  0xfb   :  { %vm331_vm4 = vcmp.ge.f32.partialorder %v327_v29, 0.0  ;;  %v335_v34 = vmul.f32 0.2, %v327_v29  ;;  %v685_v35 = vadd.f32 %v684_v33, %v683_v28  ;;  %v174_v36 = vpop.f32.mrf.mxu0 }
  0xfc   :  { %621 = vst [vmem:[%s1252_s8 + $0x10] sm:$0xff] %v1203_v32  ;;  %v686_v37 = vpop.f32.mrf.mxu1  ;;  %v175_v39 = vadd.f32 %v174_v36, %v83_v8 }
  0xfd   :  { %v328_v38 = vadd.f32 %v685_v35, %v169_v0  ;;  %v176_v40 = vpop.f32.mrf.mxu0  ;;  %v339_v41 = vsel %vm331_vm4, %v327_v29, %v335_v34 }
  0xfe   :  { %v1209_v43 = vadd.f32 %v176_v40, %v87_v9  ;;  %v687_v44 = vpop.f32.mrf.mxu1  ;;  %786 = vmatmul.mubr.f32.vlgmr.msra.gmra.mxu1 %v339_v41  ;;  %v359_v45 = vrot.slane %v339_v41, 1  ;;  %v347_v52 = vrot.slane %v339_v41, 7 }
  0xff   :  { %v688_v46 = vadd.f32 %v687_v44, %v686_v37  ;;  %vm332_vm5 = vcmp.ge.f32.partialorder %v328_v38, 0.0  ;;  %v336_v47 = vmul.f32 0.2, %v328_v38 }
 0x100   :  { %622 = vst [vmem:[%s1252_s8 + $0x18] sm:$0xff] %v1209_v43  ;;  %v360_v49 = vsel %vm196_vm0, %v358_v42, %v359_v45  ;;  %v348_v54 = vsel %vm183_vm1, %v346_v48, %v347_v52 }
 0x101   :  { %v329_v50 = vadd.f32 %v688_v46, %v175_v39  ;;  %482 = vmatprep.mubr.f32.mxu0 %v360_v49  ;;  %v340_v51 = vsel %vm332_vm5, %v328_v38, %v336_v47 }
 0x102   :  { %639 = vmatmul.mubr.msk.f32.vlgmr.msra.gmra.mxu0 %vm1076_vm2, %v346_v48  ;;  %788 = vmatprep.mubr.f32.mxu1 %v340_v51  ;;  %v361_v56 = vrot.slane %v340_v51, 1  ;;  %v349_v58 = vrot.slane %v340_v51, 7 }
 0x103   :  { %640 = vmatprep.mubr.msk.f32.mxu0 %vm196_vm0, %v359_v45  ;;  %vm333_vm6 = vcmp.ge.f32.partialorder %v329_v50, 0.0  ;;  %v337_v53 = vmul.f32 0.2, %v329_v50 }
 0x105   :  { %v341_v55 = vsel %vm333_vm6, %v329_v50, %v337_v53 }
 0x106   :  { %488 = vmatmul.mubr.f32.gmra.mxu0 %v348_v54  ;;  %v362_v57 = vrot.slane %v341_v55, 1  ;;  %789 = vmatmul.mubr.f32.gmra.mxu1 %v341_v55  ;;  %v350_v60 = vrot.slane %v341_v55, 7 }
 0x108   :  { %v363_v59 = vsel %vm196_vm0, %v361_v56, %v362_v57  ;;  %v351_v61 = vsel %vm183_vm1, %v349_v58, %v350_v60 }
 0x109   :  { %492 = vmatprep.mubr.f32.mxu0 %v363_v59 }
 0x10a   :  { %642 = vmatmul.mubr.msk.f32.gmra.mxu0 %vm1076_vm2, %v349_v58 }
 0x10b   :  { %643 = vmatprep.mubr.msk.f32.mxu0 %vm196_vm0, %v362_v57 }
 0x10e   :  { %498 = vmatmul.mubr.f32.gmra.mxu0 %v351_v61 }
 0x1be   :  { %v787_v62 = vpop.f32.mrf.mxu1 }
 0x1c0   :  { %v569_v3 = vpop.f32.mrf.mxu1 }
 0x1c2   :  { %v721_v63 = vpop.f32.mrf.mxu0 }
 0x1c4   :  { %v722_v1 = vpop.f32.mrf.mxu0 }
 0x1c5   :  { %v723_v2 = vadd.f32 %v722_v1, %v721_v63 }
 0x1c6   :  { %v724_v5 = vpop.f32.mrf.mxu0  ;;  %v790_v9 = vpop.f32.mrf.mxu1 }
 0x1c7   :  { %v570_v6 = vadd.f32 %v723_v2, %v569_v3 }
 0x1c8   :  { %v725_v7 = vpop.f32.mrf.mxu0  ;;  %v579_v20 = vpop.f32.mrf.mxu1 }
 0x1c9   :  { %v595_v8 = vadd.f32 %v644_v4, %v570_v6  ;;  %v726_v10 = vadd.f32 %v725_v7, %v724_v5 }
 0x1ca   :  { %v727_v11 = vpop.f32.mrf.mxu0 }
 0x1cb   :  { %vm599_vm7 = vcmp.ge.f32.partialorder %v595_v8, 0.0  ;;  %v603_v12 = vmul.f32 0.2, %v595_v8  ;;  %v575_v13 = vadd.f32 %v787_v62, %v726_v10 }
 0x1cc   :  { %v728_v14 = vpop.f32.mrf.mxu0 }
 0x1cd   :  { %v607_v16 = vsel %vm599_vm7, %v595_v8, %v603_v12  ;;  %v596_v17 = vadd.f32 %v644_v4, %v575_v13  ;;  %v729_v18 = vadd.f32 %v728_v14, %v727_v11 }
 0x1ce   :  { %v611_v19 = vadd.f32 %v607_v16, %v1191_v15  ;;  %v730_v21 = vpop.f32.mrf.mxu0 }
 0x1cf   :  { %vm600_vm8 = vcmp.ge.f32.partialorder %v596_v17, 0.0  ;;  %v604_v22 = vmul.f32 0.2, %v596_v17  ;;  %v580_v24 = vadd.f32 %v729_v18, %v579_v20 }
 0x1d0   :  { %615 = vst [vmem:[%s1251_s7] sm:$0xff] %v611_v19  ;;  %v731_v25 = vpop.f32.mrf.mxu0 }
 0x1d1   :  { %v608_v26 = vsel %vm600_vm8, %v596_v17, %v604_v22  ;;  %v597_v27 = vadd.f32 %v644_v4, %v580_v24  ;;  %v732_v28 = vadd.f32 %v731_v25, %v730_v21 }
 0x1d2   :  { %v612_v29 = vadd.f32 %v608_v26, %v1197_v23 }
 0x1d3   :  { %vm601_vm9 = vcmp.ge.f32.partialorder %v597_v27, 0.0  ;;  %v605_v0 = vmul.f32 0.2, %v597_v27  ;;  %v585_v30 = vadd.f32 %v790_v9, %v732_v28 }
 0x1d4   :  { %616 = vst [vmem:[%s1251_s7 + $0x8] sm:$0xff] %v612_v29 }
 0x1d5   :  { %v609_v15 = vsel %vm601_vm9, %v597_v27, %v605_v0  ;;  %v598_v31 = vadd.f32 %v644_v4, %v585_v30 }
 0x1d6   :  { %v613_v33 = vadd.f32 %v609_v15, %v1203_v32 }
 0x1d7   :  { %vm602_vm10 = vcmp.ge.f32.partialorder %v598_v31, 0.0  ;;  %v606_v34 = vmul.f32 0.2, %v598_v31 }
 0x1d8   :  { %617 = vst [vmem:[%s1251_s7 + $0x10] sm:$0xff] %v613_v33 }
 0x1d9   :  { %v610_v35 = vsel %vm602_vm10, %v598_v31, %v606_v34 }
 0x1da   :  { %v614_v23 = vadd.f32 %v610_v35, %v1209_v43 }
 0x1dc   :  { %618 = vst [vmem:[%s1251_s7 + $0x18] sm:$0xff] %v614_v23 }
 0x1dd   :  { %631 = vsyncpa [#allocation3], 1 }

// kernel: fftconvblock_forward.4
= control target key start
LH: loop header
LB: loop body
LE: loop exit
PB: predicated region body
PF: predicated region fallthrough
CT: control target
= control target key end

     0   :  { %s534_s1 = inlined_call_operand.vmem [shape: f32[128,128], index: 1, kind: input, shape index: {}]   ;;  %s535_s0 = inlined_call_operand.vmem [shape: f32[2,16,128], index: 0, kind: input, shape index: {}]   ;;  %s536_s3 = inlined_call_operand.vmem [shape: f32[128,128], index: 3, kind: input, shape index: {}]   ;;  %s537_s2 = inlined_call_operand.vmem [shape: f32[1,128], index: 2, kind: input, shape index: {}]   ;;  %s538_s4 = inlined_call_operand.vmem [shape: f32[1,128], index: 4, kind: input, shape index: {}]   ;;  %s539_s5 = inlined_call_operand.vmem [shape: f32[2,16,128], index: 5, kind: output, shape index: {}]  }
   0x1   :  { %v39_v0 = vld [vmem:[%s534_s1 + $0x78] sm:$0xff]  ;;  %v38_v1 = vld [vmem:[%s534_s1 + $0x70] sm:$0xff]  ;;  %v37_v2 = vld [vmem:[%s534_s1 + $0x68] sm:$0xff] }
   0x2   :  { %302 = vmatprep.subr.mxu0 %v39_v0  ;;  %v36_v3 = vld [vmem:[%s534_s1 + $0x60] sm:$0xff]  ;;  %v35_v5 = vld [vmem:[%s534_s1 + $0x58] sm:$0xff]  ;;  %v158_v7 = vld [vmem:[%s536_s3 + $0x70] sm:$0xff] }
   0x3   :  { %303 = vmatpush3.msra.mxu0 %v39_v0  ;;  %v20_v4 = vld [vmem:[%s535_s0] sm:$0xff]  ;;  %v159_v6 = vld [vmem:[%s536_s3 + $0x78] sm:$0xff]  ;;  %v34_v8 = vld [vmem:[%s534_s1 + $0x50] sm:$0xff] }
   0x4   :  { %304 = vmatprep.subr.mxu0 %v38_v1  ;;  %334 = vmatprep.mubr.f32.mxu0 %v20_v4  ;;  %v157_v9 = vld [vmem:[%s536_s3 + $0x68] sm:$0xff]  ;;  %v156_v11 = vld [vmem:[%s536_s3 + $0x60] sm:$0xff]  ;;  %v155_v13 = vld [vmem:[%s536_s3 + $0x58] sm:$0xff] }
   0x5   :  { %305 = vmatpush3.msra.mxu0 %v38_v1  ;;  %340 = vmatprep.subr.mxu1 %v159_v6  ;;  %v33_v10 = vld [vmem:[%s534_s1 + $0x48] sm:$0xff]  ;;  %v32_v12 = vld [vmem:[%s534_s1 + $0x40] sm:$0xff]  ;;  %v31_v14 = vld [vmem:[%s534_s1 + $0x38] sm:$0xff] }
   0x6   :  { %306 = vmatprep.subr.mxu0 %v37_v2  ;;  %341 = vmatpush3.msra.mxu1 %v159_v6  ;;  %v154_v15 = vld [vmem:[%s536_s3 + $0x50] sm:$0xff]  ;;  %v153_v17 = vld [vmem:[%s536_s3 + $0x48] sm:$0xff]  ;;  %v152_v19 = vld [vmem:[%s536_s3 + $0x40] sm:$0xff] }
   0x7   :  { %307 = vmatpush3.msra.mxu0 %v37_v2  ;;  %342 = vmatprep.subr.mxu1 %v158_v7  ;;  %v30_v16 = vld [vmem:[%s534_s1 + $0x30] sm:$0xff]  ;;  %v29_v18 = vld [vmem:[%s534_s1 + $0x28] sm:$0xff]  ;;  %v28_v20 = vld [vmem:[%s534_s1 + $0x20] sm:$0xff] }
   0x8   :  { %308 = vmatprep.subr.mxu0 %v36_v3  ;;  %343 = vmatpush3.msra.mxu1 %v158_v7  ;;  %v151_v21 = vld [vmem:[%s536_s3 + $0x38] sm:$0xff]  ;;  %v150_v23 = vld [vmem:[%s536_s3 + $0x30] sm:$0xff]  ;;  %v149_v25 = vld [vmem:[%s536_s3 + $0x28] sm:$0xff] }
   0x9   :  { %309 = vmatpush3.msra.mxu0 %v36_v3  ;;  %344 = vmatprep.subr.mxu1 %v157_v9  ;;  %v27_v22 = vld [vmem:[%s534_s1 + $0x18] sm:$0xff]  ;;  %v26_v24 = vld [vmem:[%s534_s1 + $0x10] sm:$0xff]  ;;  %v25_v26 = vld [vmem:[%s534_s1 + $0x8] sm:$0xff] }
   0xa   :  { %310 = vmatprep.subr.mxu0 %v35_v5  ;;  %345 = vmatpush3.msra.mxu1 %v157_v9  ;;  %v148_v27 = vld [vmem:[%s536_s3 + $0x20] sm:$0xff]  ;;  %v21_v29 = vld [vmem:[%s535_s0 + $0x8] sm:$0xff]  ;;  %v22_v30 = vld [vmem:[%s535_s0 + $0x10] sm:$0xff] }
   0xb   :  { %311 = vmatpush3.msra.mxu0 %v35_v5  ;;  %346 = vmatprep.subr.mxu1 %v156_v11  ;;  %v24_v28 = vld [vmem:[%s534_s1] sm:$0xff]  ;;  %v23_v31 = vld [vmem:[%s535_s0 + $0x18] sm:$0xff]  ;;  %v146_v33 = vld [vmem:[%s536_s3 + $0x10] sm:$0xff] }
   0xc   :  { %312 = vmatprep.subr.mxu0 %v34_v8  ;;  %347 = vmatpush3.msra.mxu1 %v156_v11  ;;  %v147_v32 = vld [vmem:[%s536_s3 + $0x18] sm:$0xff]  ;;  %v145_v34 = vld [vmem:[%s536_s3 + $0x8] sm:$0xff]  ;;  %v144_v35 = vld [vmem:[%s536_s3] sm:$0xff] }
   0xd   :  { %313 = vmatpush3.msra.mxu0 %v34_v8  ;;  %348 = vmatprep.subr.mxu1 %v155_v13  ;;  %v260_v36 = vld [vmem:[%s537_s2] ss:$0 sm:$0xff] }
   0xe   :  { %314 = vmatprep.subr.mxu0 %v33_v10  ;;  %349 = vmatpush3.msra.mxu1 %v155_v13  ;;  %v261_v53 = vld [vmem:[%s538_s4] ss:$0 sm:$0xff] }
   0xf   :  { %315 = vmatpush3.msra.mxu0 %v33_v10  ;;  %350 = vmatprep.subr.mxu1 %v154_v15 }
  0x10   :  { %316 = vmatprep.subr.mxu0 %v32_v12  ;;  %351 = vmatpush3.msra.mxu1 %v154_v15 }
  0x11   :  { %317 = vmatpush3.msra.mxu0 %v32_v12  ;;  %352 = vmatprep.subr.mxu1 %v153_v17 }
  0x12   :  { %318 = vmatprep.subr.mxu0 %v31_v14  ;;  %353 = vmatpush3.msra.mxu1 %v153_v17 }
  0x13   :  { %319 = vmatpush3.msra.mxu0 %v31_v14  ;;  %354 = vmatprep.subr.mxu1 %v152_v19 }
  0x14   :  { %320 = vmatprep.subr.mxu0 %v30_v16  ;;  %355 = vmatpush3.msra.mxu1 %v152_v19 }
  0x15   :  { %321 = vmatpush3.msra.mxu0 %v30_v16  ;;  %356 = vmatprep.subr.mxu1 %v151_v21 }
  0x16   :  { %322 = vmatprep.subr.mxu0 %v29_v18  ;;  %357 = vmatpush3.msra.mxu1 %v151_v21 }
  0x17   :  { %323 = vmatpush3.msra.mxu0 %v29_v18  ;;  %358 = vmatprep.subr.mxu1 %v150_v23 }
  0x18   :  { %324 = vmatprep.subr.mxu0 %v28_v20  ;;  %359 = vmatpush3.msra.mxu1 %v150_v23 }
  0x19   :  { %325 = vmatpush3.msra.mxu0 %v28_v20  ;;  %360 = vmatprep.subr.mxu1 %v149_v25 }
  0x1a   :  { %326 = vmatprep.subr.mxu0 %v27_v22  ;;  %361 = vmatpush3.msra.mxu1 %v149_v25 }
  0x1b   :  { %327 = vmatpush3.msra.mxu0 %v27_v22  ;;  %362 = vmatprep.subr.mxu1 %v148_v27 }
  0x1c   :  { %328 = vmatprep.subr.mxu0 %v26_v24  ;;  %363 = vmatpush3.msra.mxu1 %v148_v27 }
  0x1d   :  { %329 = vmatpush3.msra.mxu0 %v26_v24  ;;  %364 = vmatprep.subr.mxu1 %v147_v32 }
  0x1e   :  { %330 = vmatprep.subr.mxu0 %v25_v26  ;;  %365 = vmatpush3.msra.mxu1 %v147_v32 }
  0x1f   :  { %331 = vmatpush3.msra.mxu0 %v25_v26  ;;  %366 = vmatprep.subr.mxu1 %v146_v33 }
  0x20   :  { %332 = vmatprep.subr.mxu0 %v24_v28  ;;  %367 = vmatpush3.msra.mxu1 %v146_v33 }
  0x21   :  { %333 = vmatpush3.msra.mxu0 %v24_v28  ;;  %368 = vmatprep.subr.mxu1 %v145_v34 }
  0x22   :  { %335 = vmatmul.mubr.f32.vlgmr.msra.gmra.mxu0 %v21_v29  ;;  %369 = vmatpush3.msra.mxu1 %v145_v34 }
  0x23   :  { %337 = vmatprep.mubr.f32.mxu0 %v22_v30  ;;  %370 = vmatprep.subr.mxu1 %v144_v35 }
  0x24   :  { %371 = vmatpush3.msra.mxu1 %v144_v35 }
  0x26   :  { %338 = vmatmul.mubr.f32.gmra.mxu0 %v23_v31 }
  0xe2   :  { %v336_v37 = vpop.f32.mrf.mxu0 }
  0xe3   :  { %v119_v38 = vadd.f32 %v336_v37, %v260_v36 }
  0xe4   :  { %v113_v39 = vpop.f32.mrf.mxu0 }
  0xe5   :  { %v114_v40 = vadd.f32 %v260_v36, %v113_v39  ;;  %v137_v41 = vmul.f32 0.2, %v119_v38  ;;  %vm133_vm1 = vcmp.ge.f32.partialorder %v119_v38, 0.0 }
  0xe6   :  { %v339_v42 = vpop.f32.mrf.mxu0 }
  0xe7   :  { %v129_v43 = vadd.f32 %v339_v42, %v260_v36  ;;  %vm132_vm0 = vcmp.ge.f32.partialorder %v114_v40, 0.0  ;;  %v136_v44 = vmul.f32 0.2, %v114_v40  ;;  %v141_v49 = vsel %vm133_vm1, %v119_v38, %v137_v41 }
  0xe8   :  { %v123_v45 = vpop.f32.mrf.mxu0 }
  0xe9   :  { %v124_v46 = vadd.f32 %v260_v36, %v123_v45  ;;  %v140_v47 = vsel %vm132_vm0, %v114_v40, %v136_v44  ;;  %v139_v48 = vmul.f32 0.2, %v129_v43  ;;  %vm135_vm3 = vcmp.ge.f32.partialorder %v129_v43, 0.0 }
  0xea   :  { %372 = vmatprep.mubr.f32.mxu1 %v140_v47 }
  0xeb   :  { %v138_v50 = vmul.f32 0.2, %v124_v46  ;;  %373 = vmatmul.mubr.f32.vlgmr.msra.gmra.mxu1 %v141_v49  ;;  %vm134_vm2 = vcmp.ge.f32.partialorder %v124_v46, 0.0  ;;  %v143_v52 = vsel %vm135_vm3, %v129_v43, %v139_v48 }
  0xed   :  { %v142_v51 = vsel %vm134_vm2, %v124_v46, %v138_v50 }
  0xee   :  { %375 = vmatprep.mubr.f32.mxu1 %v142_v51 }
  0xef   :  { %376 = vmatmul.mubr.f32.gmra.mxu1 %v143_v52 }
 0x1ab   :  { %v374_v54 = vpop.f32.mrf.mxu1 }
 0x1ac   :  { %v239_v55 = vadd.f32 %v374_v54, %v261_v53 }
 0x1ad   :  { %v233_v56 = vpop.f32.mrf.mxu1 }
 0x1ae   :  { %253 = vst [vmem:[%s539_s5 + $0x8] sm:$0xff] %v239_v55  ;;  %v234_v57 = vadd.f32 %v261_v53, %v233_v56 }
 0x1af   :  { %v377_v58 = vpop.f32.mrf.mxu1 }
 0x1b0   :  { %252 = vst [vmem:[%s539_s5] sm:$0xff] %v234_v57  ;;  %v249_v59 = vadd.f32 %v377_v58, %v261_v53 }
 0x1b1   :  { %v243_v60 = vpop.f32.mrf.mxu1 }
 0x1b2   :  { %255 = vst [vmem:[%s539_s5 + $0x18] sm:$0xff] %v249_v59  ;;  %v244_v61 = vadd.f32 %v261_v53, %v243_v60 }
 0x1b4   :  { %254 = vst [vmem:[%s539_s5 + $0x10] sm:$0xff] %v244_v61 }

// kernel: fftconvblock_forward.5
= control target key start
LH: loop header
LB: loop body
LE: loop exit
PB: predicated region body
PF: predicated region fallthrough
CT: control target
= control target key end

     0   :  { %vm40_vm0 = vcmask 1040384   ;;  %vm49_vm2 = vcmask 1042432   ;;  %s1579_s2 = inlined_call_operand.vmem [shape: f32[768,128], index: 2, kind: input, shape index: {}]   ;;  %s1580_s0 = inlined_call_operand.vmem [shape: f32[2,4,512], index: 0, kind: input, shape index: {}]   ;;  %s1581_s1 = inlined_call_operand.vmem [shape: f32[2,4,512], index: 1, kind: input, shape index: {}]   ;;  %s1582_s3 = inlined_call_operand.vmem [shape: f32[2,4,512], index: 3, kind: output, shape index: {0}]   ;;  %s1583_s4 = inlined_call_operand.vmem [shape: f32[2,4,128], index: 4, kind: output, shape index: {1}]  }
   0x1   :  { %v830_v0 = vld [vmem:[%s1579_s2 + $0xf8] sm:$0xff]  ;;  %v852_v4 = vld [vmem:[%s1579_s2 + $0xf0] sm:$0xff]  ;;  %v874_v8 = vld [vmem:[%s1579_s2 + $0xe8] sm:$0xff] }
   0x2   :  { %v835_v1 = vld [vmem:[%s1579_s2 + $0x1f8] sm:$0xff]  ;;  %592 = vmatprep.subr.mxu0 %v830_v0  ;;  %v857_v5 = vld [vmem:[%s1579_s2 + $0x1f0] sm:$0xff]  ;;  %v881_v9 = vld [vmem:[%s1579_s2 + $0x1e8] sm:$0xff] }
   0x3   :  { %v840_v2 = vld [vmem:[%s1579_s2 + $0x78] sm:$0xff]  ;;  %627 = vmatprep.subr.mxu1 %v835_v1  ;;  %v864_v6 = vld [vmem:[%s1579_s2 + $0x70] sm:$0xff]  ;;  %v886_v10 = vld [vmem:[%s1579_s2 + $0x68] sm:$0xff] }
   0x4   :  { %v847_v3 = vld [vmem:[%s1579_s2 + $0x178] sm:$0xff]  ;;  %593 = vmatpush3.msra.mxu0 %v840_v2  ;;  %v869_v7 = vld [vmem:[%s1579_s2 + $0x170] sm:$0xff]  ;;  %v891_v11 = vld [vmem:[%s1579_s2 + $0x168] sm:$0xff] }
   0x5   :  { %628 = vmatpush3.msra.mxu1 %v847_v3  ;;  %594 = vmatprep.subr.mxu0 %v852_v4  ;;  %v898_v12 = vld [vmem:[%s1579_s2 + $0xe0] sm:$0xff]  ;;  %v922_v16 = vld [vmem:[%s1579_s2 + $0xd8] sm:$0xff]  ;;  %v946_v20 = vld [vmem:[%s1579_s2 + $0xd0] sm:$0xff] }
   0x6   :  { %629 = vmatprep.subr.mxu1 %v857_v5  ;;  %595 = vmatpush3.msra.mxu0 %v864_v6  ;;  %v903_v13 = vld [vmem:[%s1579_s2 + $0x1e0] sm:$0xff]  ;;  %v927_v17 = vld [vmem:[%s1579_s2 + $0x1d8] sm:$0xff]  ;;  %v951_v21 = vld [vmem:[%s1579_s2 + $0x1d0] sm:$0xff] }
   0x7   :  { %630 = vmatpush3.msra.mxu1 %v869_v7  ;;  %596 = vmatprep.subr.mxu0 %v874_v8  ;;  %v910_v14 = vld [vmem:[%s1579_s2 + $0x60] sm:$0xff]  ;;  %v934_v18 = vld [vmem:[%s1579_s2 + $0x58] sm:$0xff]  ;;  %v958_v22 = vld [vmem:[%s1579_s2 + $0x50] sm:$0xff] }
   0x8   :  { %631 = vmatprep.subr.mxu1 %v881_v9  ;;  %v915_v15 = vld [vmem:[%s1579_s2 + $0x160] sm:$0xff]  ;;  %597 = vmatpush3.msra.mxu0 %v886_v10  ;;  %v939_v19 = vld [vmem:[%s1579_s2 + $0x158] sm:$0xff]  ;;  %v963_v23 = vld [vmem:[%s1579_s2 + $0x150] sm:$0xff] }
   0x9   :  { %632 = vmatpush3.msra.mxu1 %v891_v11  ;;  %598 = vmatprep.subr.mxu0 %v898_v12  ;;  %v970_v24 = vld [vmem:[%s1579_s2 + $0xc8] sm:$0xff]  ;;  %v994_v28 = vld [vmem:[%s1579_s2 + $0xc0] sm:$0xff]  ;;  %v1018_v32 = vld [vmem:[%s1579_s2 + $0xb8] sm:$0xff] }
   0xa   :  { %633 = vmatprep.subr.mxu1 %v903_v13  ;;  %599 = vmatpush3.msra.mxu0 %v910_v14  ;;  %v975_v25 = vld [vmem:[%s1579_s2 + $0x1c8] sm:$0xff]  ;;  %v999_v29 = vld [vmem:[%s1579_s2 + $0x1c0] sm:$0xff]  ;;  %v1023_v33 = vld [vmem:[%s1579_s2 + $0x1b8] sm:$0xff] }
   0xb   :  { %634 = vmatpush3.msra.mxu1 %v915_v15  ;;  %600 = vmatprep.subr.mxu0 %v922_v16  ;;  %v982_v26 = vld [vmem:[%s1579_s2 + $0x48] sm:$0xff]  ;;  %v1006_v30 = vld [vmem:[%s1579_s2 + $0x40] sm:$0xff]  ;;  %v1030_v34 = vld [vmem:[%s1579_s2 + $0x38] sm:$0xff] }
   0xc   :  { %635 = vmatprep.subr.mxu1 %v927_v17  ;;  %601 = vmatpush3.msra.mxu0 %v934_v18  ;;  %v987_v27 = vld [vmem:[%s1579_s2 + $0x148] sm:$0xff]  ;;  %v1011_v31 = vld [vmem:[%s1579_s2 + $0x140] sm:$0xff]  ;;  %v1035_v35 = vld [vmem:[%s1579_s2 + $0x138] sm:$0xff] }
   0xd   :  { %636 = vmatpush3.msra.mxu1 %v939_v19  ;;  %602 = vmatprep.subr.mxu0 %v946_v20  ;;  %v1042_v36 = vld [vmem:[%s1579_s2 + $0xb0] sm:$0xff]  ;;  %v1066_v40 = vld [vmem:[%s1579_s2 + $0xa8] sm:$0xff]  ;;  %v1088_v44 = vld [vmem:[%s1579_s2 + $0xa0] sm:$0xff] }
   0xe   :  { %637 = vmatprep.subr.mxu1 %v951_v21  ;;  %603 = vmatpush3.msra.mxu0 %v958_v22  ;;  %v1047_v37 = vld [vmem:[%s1579_s2 + $0x1b0] sm:$0xff]  ;;  %v1071_v41 = vld [vmem:[%s1579_s2 + $0x1a8] sm:$0xff]  ;;  %v1093_v45 = vld [vmem:[%s1579_s2 + $0x1a0] sm:$0xff] }
   0xf   :  { %638 = vmatpush3.msra.mxu1 %v963_v23  ;;  %604 = vmatprep.subr.mxu0 %v970_v24  ;;  %v1054_v38 = vld [vmem:[%s1579_s2 + $0x30] sm:$0xff]  ;;  %1596 = vst [vmem:[#allocation2_spill] sm:$0xff] %v1071_v41  ;;  %v1076_v42 = vld [vmem:[%s1579_s2 + $0x28] sm:$0xff]  ;;  %1598 = vst [vmem:[#allocation4_spill] sm:$0xff] %v1093_v45 }
  0x10   :  { %639 = vmatprep.subr.mxu1 %v975_v25  ;;  %605 = vmatpush3.msra.mxu0 %v982_v26  ;;  %v1059_v39 = vld [vmem:[%s1579_s2 + $0x130] sm:$0xff]  ;;  %v1083_v43 = vld [vmem:[%s1579_s2 + $0x128] sm:$0xff]  ;;  %v1100_v46 = vld [vmem:[%s1579_s2 + $0x20] sm:$0xff] }
  0x11   :  { %640 = vmatpush3.msra.mxu1 %v987_v27  ;;  %606 = vmatprep.subr.mxu0 %v994_v28  ;;  %1597 = vst [vmem:[#allocation3_spill] sm:$0xff] %v1083_v43  ;;  %v1105_v47 = vld [vmem:[%s1579_s2 + $0x120] sm:$0xff]  ;;  %v1110_v48 = vld [vmem:[%s1579_s2 + $0x98] sm:$0xff]  ;;  %v17_v55 = vld [vmem:[%s1580_s0 + $0x8] sm:$0xff] }
  0x12   :  { %641 = vmatprep.subr.mxu1 %v999_v29  ;;  %607 = vmatpush3.msra.mxu0 %v1006_v30  ;;  %1599 = vst [vmem:[#allocation5_spill] sm:$0xff] %v1105_v47  ;;  %v16_v49 = vld [vmem:[%s1580_s0] sm:$0xff]  ;;  %v19_v50 = vld [vmem:[%s1580_s0 + $0x18] sm:$0xff]  ;;  %v21_v59 = vld [vmem:[%s1581_s1 + $0x8] sm:$0xff] }
  0x13   :  { %642 = vmatpush3.msra.mxu1 %v1011_v31  ;;  %608 = vmatprep.subr.mxu0 %v1018_v32  ;;  %v20_v51 = vld [vmem:[%s1581_s1] sm:$0xff]  ;;  %v1128_v52 = vld [vmem:[%s1579_s2 + $0x198] sm:$0xff]  ;;  %v1160_v60 = vld [vmem:[%s1579_s2 + $0x90] sm:$0xff]  ;;  %v25_v62 = vadd.f32 %v21_v59, %v17_v55 }
  0x14   :  { %643 = vmatprep.subr.mxu1 %v1023_v33  ;;  %609 = vmatpush3.msra.mxu0 %v1030_v34  ;;  %1600 = vst [vmem:[#allocation6_spill] sm:$0xff] %v1128_v52  ;;  %v23_v53 = vld [vmem:[%s1581_s1 + $0x18] sm:$0xff]  ;;  %v1133_v54 = vadd.f32 %v20_v51, %v16_v49  ;;  %v1165_v61 = vld [vmem:[%s1579_s2 + $0x190] sm:$0xff]  ;;  %v1197_v51 = vld [vmem:[%s1579_s2 + $0x188] sm:$0xff] }
  0x15   :  { %644 = vmatpush3.msra.mxu1 %v1035_v35  ;;  %610 = vmatprep.subr.mxu0 %v1042_v36  ;;  %v1143_v56 = vld [vmem:[%s1579_s2 + $0x18] sm:$0xff]  ;;  %v1150_v58 = vadd.f32 %v23_v53, %v19_v50  ;;  %1602 = vst [vmem:[#allocation8_spill] sm:$0xff] %v1165_v61  ;;  %v1176_v63 = vld [vmem:[%s1579_s2 + $0x10] sm:$0xff]  ;;  %v1192_v50 = vld [vmem:[%s1579_s2 + $0x88] sm:$0xff]  ;;  %v1202_v53 = vcombine.high %v25_v62, %v25_v62 }
  0x16   :  { %645 = vmatprep.subr.mxu1 %v1047_v37  ;;  %611 = vmatpush3.msra.mxu0 %v1054_v38  ;;  %v1148_v57 = vld [vmem:[%s1579_s2 + $0x118] sm:$0xff]  ;;  %28 = vst [vmem:[%s1582_s3] sm:$0xff] %v1133_v54  ;;  %v1181_v49 = vld [vmem:[%s1579_s2 + $0x110] sm:$0xff]  ;;  %1604 = vst [vmem:[#allocation10_spill] sm:$0xff] %v1197_v51 }
  0x17   :  { %646 = vmatpush3.msra.mxu1 %v1059_v39  ;;  %612 = vmatprep.subr.mxu0 %v1066_v40  ;;  %1601 = vst [vmem:[#allocation7_spill] sm:$0xff] %v1148_v57  ;;  %1603 = vst [vmem:[#allocation9_spill] sm:$0xff] %v1181_v49  ;;  %v1209_v55 = vld [vmem:[%s1579_s2 + $0x8] sm:$0xff] }
  0x18   :  { %647 = vmatprep.subr.mxu1 %v1071_v41  ;;  %613 = vmatpush3.msra.mxu0 %v1076_v42  ;;  %31 = vst [vmem:[%s1582_s3 + $0x18] sm:$0xff] %v1150_v58  ;;  %29 = vst [vmem:[%s1582_s3 + $0x8] sm:$0xff] %v25_v62  ;;  %v1214_v59 = vld [vmem:[%s1579_s2 + $0x108] sm:$0xff]  ;;  %v18_v41 = vld [vmem:[%s1580_s0 + $0x10] sm:$0xff] }
  0x19   :  { %648 = vmatpush3.msra.mxu1 %v1083_v43  ;;  %614 = vmatprep.subr.mxu0 %v1088_v44  ;;  %1605 = vst [vmem:[#allocation11_spill] sm:$0xff] %v1214_v59  ;;  %vm1247_vm1 = vmneg %vm40_vm0  ;;  %v1269_v43 = vld [vmem:[%s1579_s2 + $0x2f0] sm:$0xff] }
  0x1a   :  { %649 = vmatprep.subr.mxu1 %v1093_v45  ;;  %615 = vmatpush3.msra.mxu0 %v1100_v46  ;;  %v52_v45 = vcombine.high %v1133_v54, %v1133_v54 }
  0x1b   :  { %650 = vmatpush3.msra.mxu1 %v1105_v47  ;;  %616 = vmatprep.subr.mxu0 %v1110_v48  ;;  %v36_v47 = vrot.slane %v1202_v53, 7 }
  0x1c   :  { %651 = vmatprep.subr.mxu1 %v1128_v52  ;;  %617 = vmatpush3.msra.mxu0 %v1143_v56  ;;  %v1233_v52 = vld [vmem:[%s1579_s2] sm:$0xff] }
  0x1d   :  { %652 = vmatpush3.msra.mxu1 %v1148_v57  ;;  %618 = vmatprep.subr.mxu0 %v1160_v60  ;;  %v1221_v57 = vld [vmem:[%s1579_s2 + $0x80] sm:$0xff] }
  0x1e   :  { %653 = vmatprep.subr.mxu1 %v1165_v61  ;;  %619 = vmatpush3.msra.mxu0 %v1176_v63  ;;  %v1226_v61 = vld [vmem:[%s1579_s2 + $0x180] sm:$0xff] }
  0x1f   :  { %654 = vmatpush3.msra.mxu1 %v1181_v49  ;;  %1606 = vst [vmem:[#allocation12_spill] sm:$0xff] %v1226_v61  ;;  %620 = vmatprep.subr.mxu0 %v1192_v50  ;;  %v1240_v49 = vld [vmem:[%s1579_s2 + $0x100] sm:$0xff] }
  0x20   :  { %655 = vmatprep.subr.mxu1 %v1197_v51  ;;  %621 = vmatpush3.msra.mxu0 %v1209_v55  ;;  %1607 = vst [vmem:[#allocation13_spill] sm:$0xff] %v1240_v49 }
  0x21   :  { %656 = vmatpush3.msra.mxu1 %v1214_v59  ;;  %622 = vmatprep.subr.mxu0 %v1221_v57  ;;  %v1256_v59 = vld [vmem:[%s1579_s2 + $0x2f8] sm:$0xff] }
  0x22   :  { %657 = vmatprep.subr.mxu1 %v1226_v61  ;;  %623 = vmatpush3.msra.mxu0 %v1233_v52  ;;  %v1262_v61 = vld [vmem:[%s1579_s2 + $0x278] sm:$0xff] }
  0x23   :  { %218 = vmatprep.mubr.f32.mxu0 %v1133_v54  ;;  %658 = vmatpush3.msra.mxu1 %v1240_v49  ;;  %v1291_v49 = vld [vmem:[%s1579_s2 + $0x2e8] sm:$0xff] }
  0x24   :  { %288 = vmatprep.mubr.f32.mxu1 %v25_v62  ;;  %586 = vmatmul.mubr.msk.f32.vlgmr.msra.gmra.mxu0 %vm1247_vm1, %v36_v47  ;;  %v22_v62 = vld [vmem:[%s1581_s1 + $0x10] sm:$0xff] }
  0x25   :  { %289 = vmatmul.mubr.f32.vlgmr.msra.gmra.mxu1 %v52_v45  ;;  %662 = vmatprep.subr.mxu0 %v1256_v59  ;;  %v1282_v45 = vld [vmem:[%s1579_s2 + $0x270] sm:$0xff]  ;;  %v1284_v47 = vadd.f32 %v22_v62, %v18_v41  ;;  %v1489_v62 = vld [vmem:[%s1579_s2 + $0x200] sm:$0xff] }
  0x26   :  { %697 = vmatprep.subr.mxu1 %v830_v0  ;;  %663 = vmatpush3.msra.mxu0 %v1262_v61  ;;  %v1298_v0 = vld [vmem:[%s1579_s2 + $0x268] sm:$0xff]  ;;  %v1449_v41 = vld [vmem:[%s1579_s2 + $0x290] sm:$0xff] }
  0x27   :  { %698 = vmatpush3.msra.mxu1 %v840_v2  ;;  %664 = vmatprep.subr.mxu0 %v1269_v43  ;;  %30 = vst [vmem:[%s1582_s3 + $0x10] sm:$0xff] %v1284_v47  ;;  %v1309_v2 = vld [vmem:[%s1579_s2 + $0x2e0] sm:$0xff] }
  0x28   :  { %699 = vmatprep.subr.mxu1 %v852_v4  ;;  %665 = vmatpush3.msra.mxu0 %v1282_v45  ;;  %v1316_v4 = vld [vmem:[%s1579_s2 + $0x260] sm:$0xff] }
  0x29   :  { %700 = vmatpush3.msra.mxu1 %v864_v6  ;;  %666 = vmatprep.subr.mxu0 %v1291_v49  ;;  %v1323_v6 = vld [vmem:[%s1579_s2 + $0x2d8] sm:$0xff] }
  0x2a   :  { %701 = vmatprep.subr.mxu1 %v874_v8  ;;  %667 = vmatpush3.msra.mxu0 %v1298_v0  ;;  %v1330_v8 = vld [vmem:[%s1579_s2 + $0x258] sm:$0xff] }
  0x2b   :  { %702 = vmatpush3.msra.mxu1 %v886_v10  ;;  %668 = vmatprep.subr.mxu0 %v1309_v2  ;;  %v1337_v10 = vld [vmem:[%s1579_s2 + $0x2d0] sm:$0xff] }
  0x2c   :  { %703 = vmatprep.subr.mxu1 %v898_v12  ;;  %669 = vmatpush3.msra.mxu0 %v1316_v4  ;;  %v1344_v12 = vld [vmem:[%s1579_s2 + $0x250] sm:$0xff] }
  0x2d   :  { %704 = vmatpush3.msra.mxu1 %v910_v14  ;;  %670 = vmatprep.subr.mxu0 %v1323_v6  ;;  %v1351_v14 = vld [vmem:[%s1579_s2 + $0x2c8] sm:$0xff] }
  0x2e   :  { %705 = vmatprep.subr.mxu1 %v922_v16  ;;  %671 = vmatpush3.msra.mxu0 %v1330_v8  ;;  %v1358_v16 = vld [vmem:[%s1579_s2 + $0x248] sm:$0xff] }
  0x2f   :  { %706 = vmatpush3.msra.mxu1 %v934_v18  ;;  %672 = vmatprep.subr.mxu0 %v1337_v10  ;;  %v1365_v18 = vld [vmem:[%s1579_s2 + $0x2c0] sm:$0xff] }
  0x30   :  { %707 = vmatprep.subr.mxu1 %v946_v20  ;;  %673 = vmatpush3.msra.mxu0 %v1344_v12  ;;  %v1372_v20 = vld [vmem:[%s1579_s2 + $0x240] sm:$0xff] }
  0x31   :  { %708 = vmatpush3.msra.mxu1 %v958_v22  ;;  %674 = vmatprep.subr.mxu0 %v1351_v14  ;;  %v1379_v22 = vld [vmem:[%s1579_s2 + $0x2b8] sm:$0xff] }
  0x32   :  { %709 = vmatprep.subr.mxu1 %v970_v24  ;;  %675 = vmatpush3.msra.mxu0 %v1358_v16  ;;  %v1386_v24 = vld [vmem:[%s1579_s2 + $0x238] sm:$0xff] }
  0x33   :  { %710 = vmatpush3.msra.mxu1 %v982_v26  ;;  %676 = vmatprep.subr.mxu0 %v1365_v18  ;;  %v1393_v26 = vld [vmem:[%s1579_s2 + $0x2b0] sm:$0xff] }
  0x34   :  { %711 = vmatprep.subr.mxu1 %v994_v28  ;;  %677 = vmatpush3.msra.mxu0 %v1372_v20  ;;  %v1400_v28 = vld [vmem:[%s1579_s2 + $0x230] sm:$0xff] }
  0x35   :  { %712 = vmatpush3.msra.mxu1 %v1006_v30  ;;  %678 = vmatprep.subr.mxu0 %v1379_v22  ;;  %v1407_v30 = vld [vmem:[%s1579_s2 + $0x2a8] sm:$0xff] }
  0x36   :  { %713 = vmatprep.subr.mxu1 %v1018_v32  ;;  %679 = vmatpush3.msra.mxu0 %v1386_v24  ;;  %v1414_v32 = vld [vmem:[%s1579_s2 + $0x228] sm:$0xff] }
  0x37   :  { %714 = vmatpush3.msra.mxu1 %v1030_v34  ;;  %680 = vmatprep.subr.mxu0 %v1393_v26  ;;  %v1421_v34 = vld [vmem:[%s1579_s2 + $0x2a0] sm:$0xff] }
  0x38   :  { %715 = vmatprep.subr.mxu1 %v1042_v36  ;;  %681 = vmatpush3.msra.mxu0 %v1400_v28  ;;  %v1428_v36 = vld [vmem:[%s1579_s2 + $0x220] sm:$0xff] }
  0x39   :  { %716 = vmatpush3.msra.mxu1 %v1054_v38  ;;  %682 = vmatprep.subr.mxu0 %v1407_v30  ;;  %v1435_v38 = vld [vmem:[%s1579_s2 + $0x298] sm:$0xff] }
  0x3a   :  { %717 = vmatprep.subr.mxu1 %v1066_v40  ;;  %683 = vmatpush3.msra.mxu0 %v1414_v32  ;;  %v1442_v40 = vld [vmem:[%s1579_s2 + $0x218] sm:$0xff] }
  0x3b   :  { %718 = vmatpush3.msra.mxu1 %v1076_v42  ;;  %684 = vmatprep.subr.mxu0 %v1421_v34  ;;  %v1456_v42 = vld [vmem:[%s1579_s2 + $0x210] sm:$0xff] }
  0x3c   :  { %719 = vmatprep.subr.mxu1 %v1088_v44  ;;  %685 = vmatpush3.msra.mxu0 %v1428_v36  ;;  %v1463_v44 = vld [vmem:[%s1579_s2 + $0x288] sm:$0xff] }
  0x3d   :  { %720 = vmatpush3.msra.mxu1 %v1100_v46  ;;  %686 = vmatprep.subr.mxu0 %v1435_v38  ;;  %v1470_v46 = vld [vmem:[%s1579_s2 + $0x208] sm:$0xff] }
  0x3e   :  { %721 = vmatprep.subr.mxu1 %v1110_v48  ;;  %687 = vmatpush3.msra.mxu0 %v1442_v40  ;;  %v1474_v48 = vcombine.high %v1150_v58, %v1150_v58 }
  0x3f   :  { %722 = vmatpush3.msra.mxu1 %v1143_v56  ;;  %688 = vmatprep.subr.mxu0 %v1449_v41  ;;  %v1481_v56 = vld [vmem:[%s1579_s2 + $0x280] sm:$0xff] }
  0x40   :  { %723 = vmatprep.subr.mxu1 %v1160_v60  ;;  %689 = vmatpush3.msra.mxu0 %v1456_v42  ;;  %v45_v60 = vrot.slane %v1133_v54, 1  ;;  %v37_v54 = vrot.slane %v1474_v48, 7 }
  0x41   :  { %724 = vmatpush3.msra.mxu1 %v1176_v63  ;;  %690 = vmatprep.subr.mxu0 %v1463_v44 }
  0x42   :  { %725 = vmatprep.subr.mxu1 %v1192_v50  ;;  %691 = vmatpush3.msra.mxu0 %v1470_v46 }
  0x43   :  { %726 = vmatpush3.msra.mxu1 %v1209_v55  ;;  %692 = vmatprep.subr.mxu0 %v1481_v56 }
  0x44   :  { %727 = vmatprep.subr.mxu1 %v1221_v57  ;;  %693 = vmatpush3.msra.mxu0 %v1489_v62 }
  0x45   :  { %587 = vmatprep.mubr.msk.f32.mxu0 %vm49_vm2, %v45_v60  ;;  %728 = vmatpush3.msra.mxu1 %v1233_v52 }
  0x46   :  { %359 = vmatmul.mubr.f32.vlgmr.msra.gmra.mxu0 %v1202_v53  ;;  %429 = vmatprep.mubr.f32.mxu1 %v1284_v47 }
  0x47   :  { %732 = vmatprep.subr.mxu0 %v835_v1  ;;  %767 = vmatprep.subr.mxu1 %v1256_v59  ;;  %v1610_v1 = vld [vmem:[#allocation2_spill] sm:$0xff] }
  0x48   :  { %589 = vmatmul.mubr.msk.f32.vlgmr.msra.gmra.mxu1 %vm1247_vm1, %v37_v54  ;;  %733 = vmatpush3.msra.mxu0 %v847_v3  ;;  %v1611_v3 = vld [vmem:[#allocation3_spill] sm:$0xff] }
  0x49   :  { %768 = vmatpush3.msra.mxu1 %v1262_v61  ;;  %734 = vmatprep.subr.mxu0 %v857_v5  ;;  %v1612_v5 = vld [vmem:[#allocation4_spill] sm:$0xff] }
  0x4a   :  { %769 = vmatprep.subr.mxu1 %v1269_v43  ;;  %735 = vmatpush3.msra.mxu0 %v869_v7  ;;  %v1613_v7 = vld [vmem:[#allocation5_spill] sm:$0xff] }
  0x4b   :  { %770 = vmatpush3.msra.mxu1 %v1282_v45  ;;  %736 = vmatprep.subr.mxu0 %v881_v9  ;;  %v1614_v9 = vld [vmem:[#allocation6_spill] sm:$0xff] }
  0x4c   :  { %771 = vmatprep.subr.mxu1 %v1291_v49  ;;  %737 = vmatpush3.msra.mxu0 %v891_v11  ;;  %v1615_v11 = vld [vmem:[#allocation7_spill] sm:$0xff] }
  0x4d   :  { %772 = vmatpush3.msra.mxu1 %v1298_v0  ;;  %738 = vmatprep.subr.mxu0 %v903_v13  ;;  %v1616_v13 = vld [vmem:[#allocation8_spill] sm:$0xff] }
  0x4e   :  { %773 = vmatprep.subr.mxu1 %v1309_v2  ;;  %739 = vmatpush3.msra.mxu0 %v915_v15  ;;  %v1617_v15 = vld [vmem:[#allocation9_spill] sm:$0xff] }
  0x4f   :  { %774 = vmatpush3.msra.mxu1 %v1316_v4  ;;  %740 = vmatprep.subr.mxu0 %v927_v17  ;;  %v1618_v17 = vld [vmem:[#allocation10_spill] sm:$0xff] }
  0x50   :  { %775 = vmatprep.subr.mxu1 %v1323_v6  ;;  %741 = vmatpush3.msra.mxu0 %v939_v19  ;;  %v46_v19 = vrot.slane %v1284_v47, 1 }
  0x51   :  { %776 = vmatpush3.msra.mxu1 %v1330_v8  ;;  %742 = vmatprep.subr.mxu0 %v951_v21  ;;  %v1619_v21 = vld [vmem:[#allocation11_spill] sm:$0xff] }
  0x52   :  { %777 = vmatprep.subr.mxu1 %v1337_v10  ;;  %743 = vmatpush3.msra.mxu0 %v963_v23  ;;  %v53_v23 = vcombine.high %v1284_v47, %v1284_v47 }
  0x53   :  { %778 = vmatpush3.msra.mxu1 %v1344_v12  ;;  %744 = vmatprep.subr.mxu0 %v975_v25  ;;  %v1620_v25 = vld [vmem:[#allocation12_spill] sm:$0xff] }
  0x54   :  { %779 = vmatprep.subr.mxu1 %v1351_v14  ;;  %745 = vmatpush3.msra.mxu0 %v987_v27  ;;  %v1621_v27 = vld [vmem:[#allocation13_spill] sm:$0xff] }
  0x55   :  { %780 = vmatpush3.msra.mxu1 %v1358_v16  ;;  %746 = vmatprep.subr.mxu0 %v999_v29 }
  0x56   :  { %781 = vmatprep.subr.mxu1 %v1365_v18  ;;  %747 = vmatpush3.msra.mxu0 %v1011_v31 }
  0x57   :  { %782 = vmatpush3.msra.mxu1 %v1372_v20  ;;  %748 = vmatprep.subr.mxu0 %v1023_v33 }
  0x58   :  { %783 = vmatprep.subr.mxu1 %v1379_v22  ;;  %749 = vmatpush3.msra.mxu0 %v1035_v35 }
  0x59   :  { %784 = vmatpush3.msra.mxu1 %v1386_v24  ;;  %750 = vmatprep.subr.mxu0 %v1047_v37 }
  0x5a   :  { %785 = vmatprep.subr.mxu1 %v1393_v26  ;;  %751 = vmatpush3.msra.mxu0 %v1059_v39 }
  0x5b   :  { %786 = vmatpush3.msra.mxu1 %v1400_v28  ;;  %752 = vmatprep.subr.mxu0 %v1610_v1 }
  0x5c   :  { %787 = vmatprep.subr.mxu1 %v1407_v30  ;;  %753 = vmatpush3.msra.mxu0 %v1611_v3 }
  0x5d   :  { %788 = vmatpush3.msra.mxu1 %v1414_v32  ;;  %754 = vmatprep.subr.mxu0 %v1612_v5 }
  0x5e   :  { %789 = vmatprep.subr.mxu1 %v1421_v34  ;;  %755 = vmatpush3.msra.mxu0 %v1613_v7 }
  0x5f   :  { %790 = vmatpush3.msra.mxu1 %v1428_v36  ;;  %756 = vmatprep.subr.mxu0 %v1614_v9 }
  0x60   :  { %791 = vmatprep.subr.mxu1 %v1435_v38  ;;  %757 = vmatpush3.msra.mxu0 %v1615_v11 }
  0x61   :  { %792 = vmatpush3.msra.mxu1 %v1442_v40  ;;  %758 = vmatprep.subr.mxu0 %v1616_v13 }
  0x62   :  { %793 = vmatprep.subr.mxu1 %v1449_v41  ;;  %759 = vmatpush3.msra.mxu0 %v1617_v15 }
  0x63   :  { %794 = vmatpush3.msra.mxu1 %v1456_v42  ;;  %760 = vmatprep.subr.mxu0 %v1618_v17 }
  0x64   :  { %795 = vmatprep.subr.mxu1 %v1463_v44  ;;  %761 = vmatpush3.msra.mxu0 %v1619_v21 }
  0x65   :  { %796 = vmatpush3.msra.mxu1 %v1470_v46  ;;  %762 = vmatprep.subr.mxu0 %v1620_v25 }
  0x66   :  { %797 = vmatprep.subr.mxu1 %v1481_v56  ;;  %763 = vmatpush3.msra.mxu0 %v1621_v27 }
  0x67   :  { %499 = vmatprep.mubr.f32.mxu0 %v1150_v58  ;;  %798 = vmatpush3.msra.mxu1 %v1489_v62 }
  0x68   :  { %590 = vmatprep.mubr.msk.f32.mxu1 %vm49_vm2, %v46_v19  ;;  %500 = vmatmul.mubr.f32.vlgmr.msra.gmra.mxu0 %v53_v23 }
  0x69   :  { %570 = vmatmul.mubr.f32.vlgmr.msra.gmra.mxu1 %v1474_v48 }
  0xe4   :  { %v624_v29 = vpop.f32.mrf.mxu0 }
  0xe5   :  { %v659_v31 = vpop.f32.mrf.mxu1 }
  0xe6   :  { %v625_v33 = vpop.f32.mrf.mxu0 }
  0xe7   :  { %v660_v35 = vpop.f32.mrf.mxu1  ;;  %v626_v37 = vadd.f32 %v625_v33, %v624_v29 }
  0xe8   :  { %v661_v39 = vadd.f32 %v660_v35, %v659_v31 }
  0xea   :  { %v291_v57 = vadd.f32 %v661_v39, %v626_v37 }
 0x106   :  { %v694_v43 = vpop.f32.mrf.mxu0 }
 0x108   :  { %v695_v52 = vpop.f32.mrf.mxu0  ;;  %v729_v58 = vpop.f32.mrf.mxu1 }
 0x109   :  { %v696_v61 = vadd.f32 %v695_v52, %v694_v43 }
 0x10a   :  { %v730_v49 = vpop.f32.mrf.mxu1 }
 0x10b   :  { %v361_v63 = vadd.f32 %v696_v61, %v291_v57  ;;  %v731_v59 = vadd.f32 %v730_v49, %v729_v58 }
 0x10d   :  { %364 = vst [vmem:[%s1583_s4] sm:$0xf] %v361_v63 }
 0x128   :  { %v764_v50 = vpop.f32.mrf.mxu0 }
 0x129   :  { %v799_v51 = vpop.f32.mrf.mxu1 }
 0x12a   :  { %v765_v53 = vpop.f32.mrf.mxu0 }
 0x12b   :  { %v800_v55 = vpop.f32.mrf.mxu1  ;;  %v766_v45 = vadd.f32 %v765_v53, %v764_v50 }
 0x12c   :  { %v801_v0 = vadd.f32 %v800_v55, %v799_v51 }
 0x12d   :  { %v502_v47 = vadd.f32 %v766_v45, %v731_v59 }
 0x12f   :  { %v572_v2 = vadd.f32 %v801_v0, %v502_v47 }
 0x131   :  { %591 = vst [vmem:[%s1583_s4 + $0x4] sm:$0xf] %v572_v2 }

</bundles_post_ra>
